<compile_context>
chip_gen: v6e
topology: v6e:2x2x1
jax: 0.10.0
libtpu: 0.0.40
codegen_flags: <defaults>
</compile_context>

<pallas_src>
import jax
import jax.numpy as jnp
import numpy as np
from jax.experimental import pallas as pl
from jax.experimental.pallas import tpu as pltpu


_SMALL_INPUT_ELEMS = 32768          # below this, fused XLA einsum beats kernel launch
_VMEM_BUDGET = 24 * 1024 * 1024     # double-buffered block budget (safe on v7x/v5e)


def _round_up(x: int, m: int) -> int:
    return ((x + m - 1) // m) * m


def _largest_div_tile(dp: int, cap: int) -> int:
    """Largest multiple of 128 that divides dp (dp is a multiple of 128), <= cap."""
    cap = min(cap, dp)
    m = dp // 128
    best = 128
    for k in range(1, cap // 128 + 1):
        if m % k == 0:
            best = 128 * k
    return best


def _mix_transpose_both_kernel(w_ref, a_ref, b_ref, out_ref):
    """Collapsed-i kernel: both rows of the 2x2 mix in one invocation.

    w_ref:   SMEM (2, 2)
    a_ref:   VMEM (d0p, tile_d2)   == x2[:, 0, d2_tile]   (lane-dense)
    b_ref:   VMEM (d0p, tile_d2)   == x2[:, 1, d2_tile]   (lane-dense)
    out_ref: VMEM (tile_d2, 2*d0p) == out[d2_tile, :, :]  (lane-dense, i folded)
    """
    d0p = a_ref.shape[0]
    a_t = jnp.transpose(a_ref[...])                       # XLU transpose (tile_d2, d0p)
    b_t = jnp.transpose(b_ref[...])
    out_ref[:, :d0p] = w_ref[0, 0] * a_t + w_ref[0, 1] * b_t   # i = 0
    out_ref[:, d0p:] = w_ref[1, 0] * a_t + w_ref[1, 1] * b_t   # i = 1


def _mix_transpose_i_kernel(w_ref, a_ref, b_ref, out_ref):
    """General path: one output row (i = program_id(2)) per invocation."""
    i = pl.program_id(2)
    mixed = w_ref[i, 0] * a_ref[...] + w_ref[i, 1] * b_ref[...]   # VPU FMA
    out_ref[...] = jnp.transpose(mixed)                            # XLU transpose


def model_forward(x2: jax.Array, w: jax.Array) -> jax.Array:
    """x2: (D0, 2, D2) f32, w: (2, 2) f32  ->  (D2, 2, D0) f32."""
    assert x2.ndim == 3 and x2.shape[1] == 2
    assert w.shape == (2, 2)
    x2 = x2.astype(jnp.float32)
    w = w.astype(jnp.float32)
    D0, _, D2 = x2.shape

    # Tiny inputs: skip the kernel, let XLA fuse it.
    if x2.size < _SMALL_INPUT_ELEMS:
        return jnp.einsum("ij,bjk->bik", w, jnp.transpose(x2, (2, 1, 0)))

    # Pad only to multiples of 128 per axis (minimal extra HBM traffic).
    d0p = _round_up(D0, 128)
    d2p = _round_up(D2, 128)
    if (d0p, d2p) != (D0, D2):
        x2 = jnp.pad(x2, ((0, d0p - D0), (0, 0), (0, d2p - D2)))

    # Free contiguous reshape: fold the size-2 axis into the lane axis so every
    # VMEM block is a dense (8,128)-tiled slab.
    x2f = x2.reshape(d0p, 2 * d2p)

    # Collapsed-i path when one D0 tile (+ wide output block) fits the VMEM budget.
    max_td2 = (_VMEM_BUDGET // (32 * d0p)) // 128 * 128
    use_collapsed = (d0p <= 2048) and (max_td2 >= 256)

    cost = pl.CostEstimate(
        flops=6 * d0p * d2p,              # 2 mul + 1 add per output element (2*d0p*d2p)
        transcendentals=0,
        bytes_accessed=16 * d0p * d2p,    # read N + write N, f32
    )

    if use_collapsed:
        tile_d2 = _largest_div_tile(d2p, min(1024, max_td2))
        nb = d2p // tile_d2
        block_bytes = 32 * d0p * tile_d2                      # double-buffered in+out
        vmem_limit = max(16 << 20, min(31 << 20, block_bytes + (4 << 20)))

        out_flat = pl.pallas_call(
            _mix_transpose_both_kernel,
            out_shape=jax.ShapeDtypeStruct((d2p, 2 * d0p), jnp.float32),
            grid=(nb,),
            in_specs=[
                pl.BlockSpec(memory_space=pltpu.MemorySpace.SMEM),          # w (2,2)
                pl.BlockSpec((d0p, tile_d2), lambda bb: (0, bb)),           # j = 0 half
                pl.BlockSpec((d0p, tile_d2), lambda bb: (0, bb + nb)),      # j = 1 half
            ],
            out_specs=pl.BlockSpec((tile_d2, 2 * d0p), lambda bb: (bb, 0)),
            compiler_params=pltpu.CompilerParams(
                dimension_semantics=("parallel",),
                vmem_limit_bytes=vmem_limit,
            ),
            cost_estimate=cost,
        )(w, x2f, x2f)
    else:
        # Very large D0: tiled 3-D grid; i writes disjoint output blocks -> parallel.
        tile_d0 = _largest_div_tile(d0p, 512)
        tile_d2 = _largest_div_tile(d2p, 1024)
        nb = d2p // tile_d2
        nk = d0p // tile_d0
        block_bytes = 24 * tile_d0 * tile_d2                  # double-buffered in+out
        vmem_limit = max(16 << 20, min(31 << 20, block_bytes + (4 << 20)))

        out_flat = pl.pallas_call(
            _mix_transpose_i_kernel,
            out_shape=jax.ShapeDtypeStruct((d2p, 2 * d0p), jnp.float32),
            grid=(nb, nk, 2),
            in_specs=[
                pl.BlockSpec(memory_space=pltpu.MemorySpace.SMEM),                  # w
                pl.BlockSpec((tile_d0, tile_d2), lambda bb, kk, i: (kk, bb)),       # j=0
                pl.BlockSpec((tile_d0, tile_d2), lambda bb, kk, i: (kk, bb + nb)),  # j=1
            ],
            out_specs=pl.BlockSpec((tile_d2, tile_d0),
                                   lambda bb, kk, i: (bb, i * nk + kk)),
            compiler_params=pltpu.CompilerParams(
                dimension_semantics=("parallel", "parallel", "parallel"),
                vmem_limit_bytes=vmem_limit,
            ),
            cost_estimate=cost,
        )(w, x2f, x2f)

    out = out_flat.reshape(d2p, 2, d0p)        # free contiguous reshape
    if (d0p, d2p) != (D0, D2):
        out = out[:D2, :, :D0]
    return out


if __name__ == "__main__":
    key = jax.random.PRNGKey(0)
    k_x2, k_w, k_r = jax.random.split(key, 3)

    # Deterministic stand-in for torch.randn((2, 2)) generated inside forward.
    # TODO(synk): the original module draws a fresh random (2,2) every call; we use
    # a fixed deterministic weight to keep the kernel reproducible.
    w = jax.random.normal(k_w, (2, 2), dtype=jnp.float32)

    def reference(x2, w):
        return jnp.einsum("ij,bjk->bik", w, jnp.transpose(x2, (2, 1, 0)))

    fwd = jax.jit(model_forward)

    # Main case: 128-aligned shape -> collapsed-i Pallas path, no padding.
    D0, D2 = 256, 384
    x2 = jax.random.normal(k_x2, (D0, 2, D2), dtype=jnp.float32)
    out = jax.block_until_ready(fwd(x2, w))
    assert out.shape == (D2, 2, D0)
    np.testing.assert_allclose(np.asarray(out), np.asarray(reference(x2, w)),
                               rtol=1e-5, atol=1e-5)

    # Ragged shape -> Pallas path exercising minimal (<=127/axis) padding + slice.
    D0r, D2r = 200, 160
    x2r = jax.random.normal(k_r, (D0r, 2, D2r), dtype=jnp.float32)
    outr = jax.block_until_ready(fwd(x2r, w))
    assert outr.shape == (D2r, 2, D0r)
    np.testing.assert_allclose(np.asarray(outr), np.asarray(reference(x2r, w)),
                               rtol=1e-5, atol=1e-5)

    # Tiny shape -> XLA einsum fallback (kernel-launch overhead not worth it).
    x2s = jax.random.normal(k_x2, (16, 2, 8), dtype=jnp.float32)
    outs = jax.block_until_ready(fwd(x2s, w))
    np.testing.assert_allclose(np.asarray(outs), np.asarray(reference(x2s, w)),
                               rtol=1e-5, atol=1e-5)

    print("KERNEL_OK")
</pallas_src>

<mosaic_0001>
module attributes {stable_mosaic.version = 11 : i64} {
  func.func @_mix_transpose_both_kernel(%arg0: i32, %arg1: memref<2x2xf32, #tpu.memory_space<smem>>, %arg2: memref<256x384xf32, #tpu.memory_space<vmem>>, %arg3: memref<256x384xf32, #tpu.memory_space<vmem>>, %arg4: memref<384x512xf32, #tpu.memory_space<vmem>>) attributes {dimension_semantics = [#tpu.dimension_semantics<parallel>], iteration_bounds = array<i64: 1>, scalar_prefetch = 0 : i64, scratch_operands = 0 : i64, tpu.core_type = #tpu.core_type<tc>, window_params = [{transform_indices = @transform_0, window_bounds = array<i64: 2, 2>}, {transform_indices = @transform_1, window_bounds = array<i64: 256, 384>}, {transform_indices = @transform_2, window_bounds = array<i64: 256, 384>}, {transform_indices = @transform_3, window_bounds = array<i64: 384, 512>}]} {
    %c0 = arith.constant 0 : index
    %c0_0 = arith.constant 0 : index
    %0 = vector.load %arg2[%c0, %c0_0] : memref<256x384xf32, #tpu.memory_space<vmem>>, vector<256x384xf32>
    %1 = tpu.transpose %0, [1, 0] : vector<256x384xf32> -> vector<384x256xf32>
    %c0_1 = arith.constant 0 : index
    %c0_2 = arith.constant 0 : index
    %2 = vector.load %arg3[%c0_1, %c0_2] : memref<256x384xf32, #tpu.memory_space<vmem>>, vector<256x384xf32>
    %3 = tpu.transpose %2, [1, 0] : vector<256x384xf32> -> vector<384x256xf32>
    %c0_3 = arith.constant 0 : index
    %c0_4 = arith.constant 0 : index
    %4 = memref.load %arg1[%c0_3, %c0_4] : memref<2x2xf32, #tpu.memory_space<smem>>
    %5 = vector.broadcast %4 : f32 to vector<384x256xf32>
    %6 = arith.mulf %5, %1 : vector<384x256xf32>
    %c0_5 = arith.constant 0 : index
    %c1 = arith.constant 1 : index
    %7 = memref.load %arg1[%c0_5, %c1] : memref<2x2xf32, #tpu.memory_space<smem>>
    %8 = vector.broadcast %7 : f32 to vector<384x256xf32>
    %9 = arith.mulf %8, %3 : vector<384x256xf32>
    %10 = arith.addf %6, %9 : vector<384x256xf32>
    %c0_6 = arith.constant 0 : index
    %c0_7 = arith.constant 0 : index
    %11 = vector.load %arg4[%c0_6, %c0_7] : memref<384x512xf32, #tpu.memory_space<vmem>>, vector<384x256xf32>
    tpu.vector_store %arg4[%c0_6, %c0_7], %10 {strides = array<i32>} : memref<384x512xf32, #tpu.memory_space<vmem>>, vector<384x256xf32>,
    %c1_8 = arith.constant 1 : index
    %c0_9 = arith.constant 0 : index
    %12 = memref.load %arg1[%c1_8, %c0_9] : memref<2x2xf32, #tpu.memory_space<smem>>
    %13 = vector.broadcast %12 : f32 to vector<384x256xf32>
    %14 = arith.mulf %13, %1 : vector<384x256xf32>
    %c1_10 = arith.constant 1 : index
    %c1_11 = arith.constant 1 : index
    %15 = memref.load %arg1[%c1_10, %c1_11] : memref<2x2xf32, #tpu.memory_space<smem>>
    %16 = vector.broadcast %15 : f32 to vector<384x256xf32>
    %17 = arith.mulf %16, %3 : vector<384x256xf32>
    %18 = arith.addf %14, %17 : vector<384x256xf32>
    %c0_12 = arith.constant 0 : index
    %c256 = arith.constant 256 : index
    %19 = vector.load %arg4[%c0_12, %c256] : memref<384x512xf32, #tpu.memory_space<vmem>>, vector<384x256xf32>
    tpu.vector_store %arg4[%c0_12, %c256], %18 {strides = array<i32>} : memref<384x512xf32, #tpu.memory_space<vmem>>, vector<384x256xf32>,
    return
  }
  func.func @transform_0(%arg0: i32) -> (i32, i32) {
    %c0_i32 = arith.constant 0 : i32
    %c0_i32_0 = arith.constant 0 : i32
    %c0_i32_1 = arith.constant 0 : i32
    return %c0_i32, %c0_i32_0 : i32, i32
  }
  func.func @transform_1(%arg0: i32) -> (i32, i32) {
    %c0_i32 = arith.constant 0 : i32
    %c0_i32_0 = arith.constant 0 : i32
    return %c0_i32, %arg0 : i32, i32
  }
  func.func @transform_2(%arg0: i32) -> (i32, i32) {
    %c1_i32 = arith.constant 1 : i32
    %0 = arith.addi %arg0, %c1_i32 : i32
    %c0_i32 = arith.constant 0 : i32
    %c0_i32_0 = arith.constant 0 : i32
    return %c0_i32, %0 : i32, i32
  }
  func.func @transform_3(%arg0: i32) -> (i32, i32) {
    %c0_i32 = arith.constant 0 : i32
    %c0_i32_0 = arith.constant 0 : i32
    return %arg0, %c0_i32 : i32, i32
  }
}

</mosaic_0001>

<bundles_post_ra>
// kernel: model_forward.1
= control target key start
LH: loop header
LB: loop body
LE: loop exit
PB: predicated region body
PF: predicated region fallthrough
CT: control target
= control target key end

     0   :  { %8 = vsyncpa [#allocation3], 0  ;;  %s4459_s0 = inlined_call_operand.vmem [shape: f32[2,2], index: 0, kind: input, shape index: {}]   ;;  %s4460_s1 = inlined_call_operand.vmem [shape: f32[256,768], index: 1, kind: input, shape index: {}, may-alias: {1,2}]   ;;  %s4461_s2 = inlined_call_operand.vmem [shape: f32[256,768], index: 2, kind: input, shape index: {}, may-alias: {1,2}]   ;;  %s4462_s3 = inlined_call_operand.vmem [shape: f32[384,512], index: 3, kind: output, shape index: {}]  }
   0x1   :  { %s15_s14 = sshll.u32 %s4459_s0, 4  ;;  %v1958_v0 = vld [vmem:[%s4460_s1] sm:$0xff]  ;;  %v1963_v1 = vld [vmem:[%s4460_s1 + $0x8] sm:$0xff]  ;;  %v1968_v2 = vld [vmem:[%s4460_s1 + $0x10] sm:$0xff]  ;;  %s16_s14 = int_to_ptr.vmem [resolvable:$true] %s15_s14 }
   0x2   :  { %v1973_v3 = vld [vmem:[%s4460_s1 + $0x30] sm:$0xff]  ;;  %v1978_v4 = vld [vmem:[%s4460_s1 + $0x38] sm:$0xff]  ;;  %s1917_s24 = scalar_lea.vmem %s16_s14, 32  ;;  %p1922_p1 = scmp.lt.s32.totalorder %s16_s14, %s16_s14 }
   0x3   :  { %p1918_p0 = scmp.ne.s32.totalorder %s16_s14, %s1917_s24  ;;  %p1923_p2 = scmp.lt.s32.totalorder %s1917_s24, %s1917_s24 }
   0x5   :  { %p1924_p3 = por %p1923_p2, %p1922_p1 }
   0x7   :  { %p1925_p4 = pnand %p1924_p3, %p1918_p0 }
   0x9   :  { %1928 = shalt.err (!%p1925_p4)
}
   0xa   :  { %s1931_s25 = smov [#allocation2]   ;;  %v1983_v5 = vld [vmem:[%s4460_s1 + $0x40] sm:$0xff]  ;;  %v1993_v7 = vld [vmem:[%s4460_s1 + $0x68] sm:$0xff]  ;;  %v1998_v8 = vld [vmem:[%s4460_s1 + $0x70] sm:$0xff] }
   0xb   :  { %18 = dma.vmem_to_smem %s16_s14, 32, %s1931_s25, [#allocation3]   ;;  %v1988_v6 = vld [vmem:[%s4460_s1 + $0x60] sm:$0xff]  ;;  %v2003_v9 = vld [vmem:[%s4460_s1 + $0x90] sm:$0xff]  ;;  %v2008_v10 = vld [vmem:[%s4460_s1 + $0x98] sm:$0xff] }
   0xc   :  { %v2013_v11 = vld [vmem:[%s4460_s1 + $0xa0] sm:$0xff]  ;;  %v2023_v13 = vld [vmem:[%s4460_s1 + $0xc8] sm:$0xff]  ;;  %v2028_v14 = vld [vmem:[%s4460_s1 + $0xd0] sm:$0xff] }
   0xd   :  { %v2018_v12 = vld [vmem:[%s4460_s1 + $0xc0] sm:$0xff]  ;;  %v2033_v15 = vld [vmem:[%s4460_s1 + $0xf0] sm:$0xff]  ;;  %v2038_v16 = vld [vmem:[%s4460_s1 + $0xf8] sm:$0xff] }
   0xe   :  { %v2043_v17 = vld [vmem:[%s4460_s1 + $0x100] sm:$0xff]  ;;  %v2053_v19 = vld [vmem:[%s4460_s1 + $0x128] sm:$0xff]  ;;  %v2058_v20 = vld [vmem:[%s4460_s1 + $0x130] sm:$0xff] }
   0xf   :  { %v2048_v18 = vld [vmem:[%s4460_s1 + $0x120] sm:$0xff]  ;;  %v2063_v21 = vld [vmem:[%s4460_s1 + $0x150] sm:$0xff]  ;;  %v2068_v22 = vld [vmem:[%s4460_s1 + $0x158] sm:$0xff] }
  0x10   :  { %v2073_v23 = vld [vmem:[%s4460_s1 + $0x160] sm:$0xff]  ;;  %v2083_v25 = vld [vmem:[%s4460_s1 + $0x188] sm:$0xff]  ;;  %v2088_v26 = vld [vmem:[%s4460_s1 + $0x190] sm:$0xff] }
  0x11   :  { %v2078_v24 = vld [vmem:[%s4460_s1 + $0x180] sm:$0xff]  ;;  %v2093_v27 = vld [vmem:[%s4460_s1 + $0x1b0] sm:$0xff]  ;;  %v2098_v28 = vld [vmem:[%s4460_s1 + $0x1b8] sm:$0xff] }
  0x12   :  { %v2103_v29 = vld [vmem:[%s4460_s1 + $0x1c0] sm:$0xff]  ;;  %v2113_v31 = vld [vmem:[%s4460_s1 + $0x1e8] sm:$0xff]  ;;  %v2118_v32 = vld [vmem:[%s4460_s1 + $0x1f0] sm:$0xff] }
  0x13   :  { %v2108_v30 = vld [vmem:[%s4460_s1 + $0x1e0] sm:$0xff]  ;;  %v2123_v33 = vld [vmem:[%s4460_s1 + $0x210] sm:$0xff]  ;;  %v2128_v34 = vld [vmem:[%s4460_s1 + $0x218] sm:$0xff] }
  0x14   :  { %v2133_v35 = vld [vmem:[%s4460_s1 + $0x220] sm:$0xff]  ;;  %v2143_v37 = vld [vmem:[%s4460_s1 + $0x248] sm:$0xff]  ;;  %v2148_v38 = vld [vmem:[%s4460_s1 + $0x250] sm:$0xff] }
  0x15   :  { %v2138_v36 = vld [vmem:[%s4460_s1 + $0x240] sm:$0xff]  ;;  %v2153_v39 = vld [vmem:[%s4460_s1 + $0x270] sm:$0xff]  ;;  %v2158_v40 = vld [vmem:[%s4460_s1 + $0x278] sm:$0xff] }
  0x16   :  { %v2163_v41 = vld [vmem:[%s4460_s1 + $0x280] sm:$0xff]  ;;  %v2173_v43 = vld [vmem:[%s4460_s1 + $0x2a8] sm:$0xff]  ;;  %v2178_v44 = vld [vmem:[%s4460_s1 + $0x2b0] sm:$0xff] }
  0x17   :  { %4521 = vst [vmem:[#allocation7_spill] sm:$0xff] %v2163_v41  ;;  %v2168_v42 = vld [vmem:[%s4460_s1 + $0x2a0] sm:$0xff]  ;;  %4522 = vst [vmem:[#allocation8_spill] sm:$0xff] %v2178_v44  ;;  %v2183_v45 = vld [vmem:[%s4460_s1 + $0x2d0] sm:$0xff] }
  0x18   :  { %v2188_v46 = vld [vmem:[%s4460_s1 + $0x2d8] sm:$0xff]  ;;  %v2193_v47 = vld [vmem:[%s4460_s1 + $0x2e0] sm:$0xff]  ;;  %v2203_v49 = vld [vmem:[%s4460_s1 + $0x308] sm:$0xff] }
  0x19   :  { %4523 = vst [vmem:[#allocation9_spill] sm:$0xff] %v2193_v47  ;;  %v2198_v48 = vld [vmem:[%s4460_s1 + $0x300] sm:$0xff]  ;;  %4524 = vst [vmem:[#allocation10_spill] sm:$0xff] %v2203_v49  ;;  %v2208_v50 = vld [vmem:[%s4460_s1 + $0x310] sm:$0xff] }
  0x1a   :  { %4525 = vst [vmem:[#allocation11_spill] sm:$0xff] %v2208_v50  ;;  %v2213_v51 = vld [vmem:[%s4460_s1 + $0x330] sm:$0xff]  ;;  %v2218_v52 = vld [vmem:[%s4460_s1 + $0x338] sm:$0xff]  ;;  %v2223_v53 = vld [vmem:[%s4460_s1 + $0x340] sm:$0xff] }
  0x1b   :  { %4526 = vst [vmem:[#allocation12_spill] sm:$0xff] %v2218_v52  ;;  %4527 = vst [vmem:[#allocation13_spill] sm:$0xff] %v2223_v53  ;;  %v2228_v54 = vld [vmem:[%s4460_s1 + $0x360] sm:$0xff]  ;;  %v2233_v55 = vld [vmem:[%s4460_s1 + $0x368] sm:$0xff] }
  0x1c   :  { %4528 = vst [vmem:[#allocation14_spill] sm:$0xff] %v2233_v55  ;;  %v2238_v56 = vld [vmem:[%s4460_s1 + $0x370] sm:$0xff]  ;;  %v2248_v58 = vld [vmem:[%s4460_s1 + $0x398] sm:$0xff]  ;;  %v2253_v59 = vld [vmem:[%s4460_s1 + $0x3a0] sm:$0xff] }
  0x1d   :  { %4529 = vst [vmem:[#allocation15_spill] sm:$0xff] %v2238_v56  ;;  %v2243_v57 = vld [vmem:[%s4460_s1 + $0x390] sm:$0xff]  ;;  %4530 = vst [vmem:[#allocation16_spill] sm:$0xff] %v2248_v58  ;;  %v2258_v60 = vld [vmem:[%s4460_s1 + $0x3c0] sm:$0xff] }
  0x1e   :  { %4531 = vst [vmem:[#allocation17_spill] sm:$0xff] %v2253_v59  ;;  %v2263_v61 = vld [vmem:[%s4460_s1 + $0x3c8] sm:$0xff]  ;;  %v2268_v62 = vld [vmem:[%s4460_s1 + $0x3d0] sm:$0xff]  ;;  %v2278_v58 = vld [vmem:[%s4460_s1 + $0x3f8] sm:$0xff] }
  0x1f   :  { %4532 = vst [vmem:[#allocation18_spill] sm:$0xff] %v2263_v61  ;;  %4533 = vst [vmem:[#allocation19_spill] sm:$0xff] %v2268_v62  ;;  %v2273_v63 = vld [vmem:[%s4460_s1 + $0x3f0] sm:$0xff]  ;;  %v2283_v59 = vld [vmem:[%s4460_s1 + $0x400] sm:$0xff] }
  0x20   :  { %4534 = vst [vmem:[#allocation20_spill] sm:$0xff] %v2278_v58  ;;  %4535 = vst [vmem:[#allocation21_spill] sm:$0xff] %v2283_v59  ;;  %v2288_v61 = vld [vmem:[%s4460_s1 + $0x420] sm:$0xff]  ;;  %v2293_v62 = vld [vmem:[%s4460_s1 + $0x428] sm:$0xff] }
  0x21   :  { %4536 = vst [vmem:[#allocation22_spill] sm:$0xff] %v2293_v62  ;;  %v2298_v55 = vld [vmem:[%s4460_s1 + $0x430] sm:$0xff]  ;;  %v2308_v59 = vld [vmem:[%s4460_s1 + $0x458] sm:$0xff]  ;;  %v2313_v56 = vld [vmem:[%s4460_s1 + $0x460] sm:$0xff] }
  0x22   :  { %4537 = vst [vmem:[#allocation23_spill] sm:$0xff] %v2298_v55  ;;  %v2303_v58 = vld [vmem:[%s4460_s1 + $0x450] sm:$0xff]  ;;  %4538 = vst [vmem:[#allocation24_spill] sm:$0xff] %v2308_v59  ;;  %v2318_v62 = vld [vmem:[%s4460_s1 + $0x480] sm:$0xff] }
  0x23   :  { %4539 = vst [vmem:[#allocation25_spill] sm:$0xff] %v2313_v56  ;;  %v2323_v55 = vld [vmem:[%s4460_s1 + $0x488] sm:$0xff]  ;;  %v2328_v52 = vld [vmem:[%s4460_s1 + $0x490] sm:$0xff]  ;;  %v2338_v56 = vld [vmem:[%s4460_s1 + $0x4b8] sm:$0xff] }
  0x24   :  { %4540 = vst [vmem:[#allocation26_spill] sm:$0xff] %v2323_v55  ;;  %4541 = vst [vmem:[#allocation27_spill] sm:$0xff] %v2328_v52  ;;  %v2333_v59 = vld [vmem:[%s4460_s1 + $0x4b0] sm:$0xff]  ;;  %v2343_v53 = vld [vmem:[%s4460_s1 + $0x4c0] sm:$0xff] }
  0x25   :  { %4542 = vst [vmem:[#allocation28_spill] sm:$0xff] %v2338_v56  ;;  %4543 = vst [vmem:[#allocation29_spill] sm:$0xff] %v2343_v53  ;;  %v2348_v55 = vld [vmem:[%s4460_s1 + $0x4e0] sm:$0xff]  ;;  %v2353_v52 = vld [vmem:[%s4460_s1 + $0x4e8] sm:$0xff] }
  0x26   :  { %4544 = vst [vmem:[#allocation30_spill] sm:$0xff] %v2353_v52  ;;  %v2358_v49 = vld [vmem:[%s4460_s1 + $0x4f0] sm:$0xff]  ;;  %v2368_v53 = vld [vmem:[%s4460_s1 + $0x518] sm:$0xff]  ;;  %v2373_v50 = vld [vmem:[%s4460_s1 + $0x520] sm:$0xff] }
  0x27   :  { %4545 = vst [vmem:[#allocation31_spill] sm:$0xff] %v2358_v49  ;;  %v2363_v56 = vld [vmem:[%s4460_s1 + $0x510] sm:$0xff]  ;;  %4546 = vst [vmem:[#allocation32_spill] sm:$0xff] %v2368_v53  ;;  %v2378_v52 = vld [vmem:[%s4460_s1 + $0x540] sm:$0xff] }
  0x28   :  { %4547 = vst [vmem:[#allocation33_spill] sm:$0xff] %v2373_v50  ;;  %v2383_v49 = vld [vmem:[%s4460_s1 + $0x548] sm:$0xff]  ;;  %v2388_v47 = vld [vmem:[%s4460_s1 + $0x550] sm:$0xff]  ;;  %v2398_v50 = vld [vmem:[%s4460_s1 + $0x578] sm:$0xff] }
  0x29   :  { %4548 = vst [vmem:[#allocation34_spill] sm:$0xff] %v2383_v49  ;;  %4549 = vst [vmem:[#allocation35_spill] sm:$0xff] %v2388_v47  ;;  %v2393_v53 = vld [vmem:[%s4460_s1 + $0x570] sm:$0xff]  ;;  %v2403_v44 = vld [vmem:[%s4460_s1 + $0x580] sm:$0xff] }
  0x2a   :  { %4550 = vst [vmem:[#allocation36_spill] sm:$0xff] %v2398_v50  ;;  %4551 = vst [vmem:[#allocation37_spill] sm:$0xff] %v2403_v44  ;;  %v2408_v49 = vld [vmem:[%s4460_s1 + $0x5a0] sm:$0xff]  ;;  %v2413_v47 = vld [vmem:[%s4460_s1 + $0x5a8] sm:$0xff] }
  0x2b   :  { %4552 = vst [vmem:[#allocation38_spill] sm:$0xff] %v2408_v49  ;;  %4553 = vst [vmem:[#allocation39_spill] sm:$0xff] %v2413_v47  ;;  %v2418_v41 = vld [vmem:[%s4460_s1 + $0x5b0] sm:$0xff]  ;;  %v2428_v44 = vld [vmem:[%s4460_s1 + $0x5d8] sm:$0xff] }
  0x2c   :  { %4554 = vst [vmem:[#allocation40_spill] sm:$0xff] %v2418_v41  ;;  %v2423_v50 = vld [vmem:[%s4460_s1 + $0x5d0] sm:$0xff]  ;;  %4556 = vst [vmem:[#allocation42_spill] sm:$0xff] %v2428_v44  ;;  %v2433_v49 = vld [vmem:[%s4460_s1 + $0x5e0] sm:$0xff] }
  0x2d   :  { %4555 = vst [vmem:[#allocation41_spill] sm:$0xff] %v2423_v50  ;;  %4557 = vst [vmem:[#allocation43_spill] sm:$0xff] %v2433_v49  ;;  %v2438_v47 = vld [vmem:[%s4461_s2 + $0x18] sm:$0xff]  ;;  %v2443_v41 = vld [vmem:[%s4461_s2 + $0x20] sm:$0xff] }
  0x2e   :  { %4558 = vst [vmem:[#allocation44_spill] sm:$0xff] %v2438_v47  ;;  %4559 = vst [vmem:[#allocation45_spill] sm:$0xff] %v2443_v41  ;;  %v2448_v50 = vld [vmem:[%s4461_s2 + $0x28] sm:$0xff]  ;;  %v2458_v49 = vld [vmem:[%s4461_s2 + $0x50] sm:$0xff] }
  0x2f   :  { %4560 = vst [vmem:[#allocation46_spill] sm:$0xff] %v2448_v50  ;;  %v2453_v44 = vld [vmem:[%s4461_s2 + $0x48] sm:$0xff]  ;;  %4562 = vst [vmem:[#allocation48_spill] sm:$0xff] %v2458_v49  ;;  %v2463_v47 = vld [vmem:[%s4461_s2 + $0x58] sm:$0xff] }
  0x30   :  { %4561 = vst [vmem:[#allocation47_spill] sm:$0xff] %v2453_v44  ;;  %4563 = vst [vmem:[#allocation49_spill] sm:$0xff] %v2463_v47  ;;  %v2468_v41 = vld [vmem:[%s4461_s2 + $0x78] sm:$0xff]  ;;  %v2473_v50 = vld [vmem:[%s4461_s2 + $0x80] sm:$0xff] }
  0x31   :  { %4564 = vst [vmem:[#allocation50_spill] sm:$0xff] %v2468_v41  ;;  %4565 = vst [vmem:[#allocation51_spill] sm:$0xff] %v2473_v50  ;;  %v2478_v44 = vld [vmem:[%s4461_s2 + $0x88] sm:$0xff]  ;;  %v2488_v47 = vld [vmem:[%s4461_s2 + $0xb0] sm:$0xff] }
  0x32   :  { %4566 = vst [vmem:[#allocation52_spill] sm:$0xff] %v2478_v44  ;;  %v2483_v49 = vld [vmem:[%s4461_s2 + $0xa8] sm:$0xff]  ;;  %4568 = vst [vmem:[#allocation54_spill] sm:$0xff] %v2488_v47  ;;  %v2493_v41 = vld [vmem:[%s4461_s2 + $0xb8] sm:$0xff] }
  0x33   :  { %4567 = vst [vmem:[#allocation53_spill] sm:$0xff] %v2483_v49  ;;  %4569 = vst [vmem:[#allocation55_spill] sm:$0xff] %v2493_v41  ;;  %v2498_v50 = vld [vmem:[%s4461_s2 + $0xd8] sm:$0xff]  ;;  %v2503_v44 = vld [vmem:[%s4461_s2 + $0xe0] sm:$0xff] }
  0x34   :  { %4570 = vst [vmem:[#allocation56_spill] sm:$0xff] %v2498_v50  ;;  %4571 = vst [vmem:[#allocation57_spill] sm:$0xff] %v2503_v44  ;;  %v2508_v49 = vld [vmem:[%s4461_s2 + $0xe8] sm:$0xff]  ;;  %v2518_v41 = vld [vmem:[%s4461_s2 + $0x110] sm:$0xff] }
  0x35   :  { %4572 = vst [vmem:[#allocation58_spill] sm:$0xff] %v2508_v49  ;;  %v2513_v47 = vld [vmem:[%s4461_s2 + $0x108] sm:$0xff]  ;;  %4574 = vst [vmem:[#allocation60_spill] sm:$0xff] %v2518_v41  ;;  %v2523_v50 = vld [vmem:[%s4461_s2 + $0x118] sm:$0xff] }
  0x36   :  { %4573 = vst [vmem:[#allocation59_spill] sm:$0xff] %v2513_v47  ;;  %4575 = vst [vmem:[#allocation61_spill] sm:$0xff] %v2523_v50  ;;  %v2528_v44 = vld [vmem:[%s4461_s2 + $0x138] sm:$0xff]  ;;  %v2533_v49 = vld [vmem:[%s4461_s2 + $0x140] sm:$0xff] }
  0x37   :  { %4576 = vst [vmem:[#allocation62_spill] sm:$0xff] %v2528_v44  ;;  %4577 = vst [vmem:[#allocation63_spill] sm:$0xff] %v2533_v49  ;;  %v2538_v47 = vld [vmem:[%s4461_s2 + $0x148] sm:$0xff]  ;;  %v2548_v50 = vld [vmem:[%s4461_s2 + $0x170] sm:$0xff] }
  0x38   :  { %4578 = vst [vmem:[#allocation64_spill] sm:$0xff] %v2538_v47  ;;  %v2543_v41 = vld [vmem:[%s4461_s2 + $0x168] sm:$0xff]  ;;  %4580 = vst [vmem:[#allocation66_spill] sm:$0xff] %v2548_v50  ;;  %v2553_v44 = vld [vmem:[%s4461_s2 + $0x178] sm:$0xff] }
  0x39   :  { %4579 = vst [vmem:[#allocation65_spill] sm:$0xff] %v2543_v41  ;;  %4581 = vst [vmem:[#allocation67_spill] sm:$0xff] %v2553_v44  ;;  %v2558_v49 = vld [vmem:[%s4461_s2 + $0x198] sm:$0xff]  ;;  %v2563_v47 = vld [vmem:[%s4461_s2 + $0x1a0] sm:$0xff] }
  0x3a   :  { %4582 = vst [vmem:[#allocation68_spill] sm:$0xff] %v2558_v49  ;;  %4583 = vst [vmem:[#allocation69_spill] sm:$0xff] %v2563_v47  ;;  %v2568_v41 = vld [vmem:[%s4461_s2 + $0x1a8] sm:$0xff]  ;;  %v2578_v44 = vld [vmem:[%s4461_s2 + $0x1d0] sm:$0xff] }
  0x3b   :  { %4584 = vst [vmem:[#allocation70_spill] sm:$0xff] %v2568_v41  ;;  %v2573_v50 = vld [vmem:[%s4461_s2 + $0x1c8] sm:$0xff]  ;;  %4586 = vst [vmem:[#allocation72_spill] sm:$0xff] %v2578_v44  ;;  %v2583_v49 = vld [vmem:[%s4461_s2 + $0x1d8] sm:$0xff] }
  0x3c   :  { %4585 = vst [vmem:[#allocation71_spill] sm:$0xff] %v2573_v50  ;;  %4587 = vst [vmem:[#allocation73_spill] sm:$0xff] %v2583_v49  ;;  %v2588_v47 = vld [vmem:[%s4461_s2 + $0x1f8] sm:$0xff]  ;;  %v2593_v41 = vld [vmem:[%s4461_s2 + $0x200] sm:$0xff] }
  0x3d   :  { %4588 = vst [vmem:[#allocation74_spill] sm:$0xff] %v2588_v47  ;;  %4589 = vst [vmem:[#allocation75_spill] sm:$0xff] %v2593_v41  ;;  %v2598_v50 = vld [vmem:[%s4461_s2 + $0x208] sm:$0xff]  ;;  %v2608_v49 = vld [vmem:[%s4461_s2 + $0x230] sm:$0xff] }
  0x3e   :  { %4590 = vst [vmem:[#allocation76_spill] sm:$0xff] %v2598_v50  ;;  %v2603_v44 = vld [vmem:[%s4461_s2 + $0x228] sm:$0xff]  ;;  %4592 = vst [vmem:[#allocation78_spill] sm:$0xff] %v2608_v49  ;;  %v2613_v47 = vld [vmem:[%s4461_s2 + $0x238] sm:$0xff] }
  0x3f   :  { %4591 = vst [vmem:[#allocation77_spill] sm:$0xff] %v2603_v44  ;;  %4593 = vst [vmem:[#allocation79_spill] sm:$0xff] %v2613_v47  ;;  %v2618_v41 = vld [vmem:[%s4461_s2 + $0x258] sm:$0xff]  ;;  %v2623_v50 = vld [vmem:[%s4461_s2 + $0x260] sm:$0xff] }
  0x40   :  { %4594 = vst [vmem:[#allocation80_spill] sm:$0xff] %v2618_v41  ;;  %4595 = vst [vmem:[#allocation81_spill] sm:$0xff] %v2623_v50  ;;  %v2628_v44 = vld [vmem:[%s4461_s2 + $0x268] sm:$0xff]  ;;  %v2638_v47 = vld [vmem:[%s4461_s2 + $0x290] sm:$0xff] }
  0x41   :  { %4596 = vst [vmem:[#allocation82_spill] sm:$0xff] %v2628_v44  ;;  %v2633_v49 = vld [vmem:[%s4461_s2 + $0x288] sm:$0xff]  ;;  %4598 = vst [vmem:[#allocation84_spill] sm:$0xff] %v2638_v47  ;;  %v2643_v41 = vld [vmem:[%s4461_s2 + $0x298] sm:$0xff] }
  0x42   :  { %4597 = vst [vmem:[#allocation83_spill] sm:$0xff] %v2633_v49  ;;  %4599 = vst [vmem:[#allocation85_spill] sm:$0xff] %v2643_v41  ;;  %v2648_v50 = vld [vmem:[%s4461_s2 + $0x2b8] sm:$0xff]  ;;  %v2653_v44 = vld [vmem:[%s4461_s2 + $0x2c0] sm:$0xff] }
  0x43   :  { %4600 = vst [vmem:[#allocation86_spill] sm:$0xff] %v2648_v50  ;;  %4601 = vst [vmem:[#allocation87_spill] sm:$0xff] %v2653_v44  ;;  %v2658_v49 = vld [vmem:[%s4461_s2 + $0x2c8] sm:$0xff]  ;;  %v2668_v41 = vld [vmem:[%s4461_s2 + $0x2f0] sm:$0xff] }
  0x44   :  { %4602 = vst [vmem:[#allocation88_spill] sm:$0xff] %v2658_v49  ;;  %v2663_v47 = vld [vmem:[%s4461_s2 + $0x2e8] sm:$0xff]  ;;  %4604 = vst [vmem:[#allocation90_spill] sm:$0xff] %v2668_v41  ;;  %v2673_v50 = vld [vmem:[%s4461_s2 + $0x2f8] sm:$0xff] }
  0x45   :  { %4603 = vst [vmem:[#allocation89_spill] sm:$0xff] %v2663_v47  ;;  %4605 = vst [vmem:[#allocation91_spill] sm:$0xff] %v2673_v50  ;;  %v2678_v44 = vld [vmem:[%s4461_s2 + $0x318] sm:$0xff]  ;;  %v2683_v49 = vld [vmem:[%s4461_s2 + $0x320] sm:$0xff] }
  0x46   :  { %4606 = vst [vmem:[#allocation92_spill] sm:$0xff] %v2678_v44  ;;  %4607 = vst [vmem:[#allocation93_spill] sm:$0xff] %v2683_v49  ;;  %v2688_v47 = vld [vmem:[%s4461_s2 + $0x328] sm:$0xff]  ;;  %v2698_v50 = vld [vmem:[%s4461_s2 + $0x350] sm:$0xff] }
  0x47   :  { %4608 = vst [vmem:[#allocation94_spill] sm:$0xff] %v2688_v47  ;;  %v2693_v41 = vld [vmem:[%s4461_s2 + $0x348] sm:$0xff]  ;;  %4610 = vst [vmem:[#allocation96_spill] sm:$0xff] %v2698_v50  ;;  %v2703_v44 = vld [vmem:[%s4461_s2 + $0x358] sm:$0xff] }
  0x48   :  { %4609 = vst [vmem:[#allocation95_spill] sm:$0xff] %v2693_v41  ;;  %4611 = vst [vmem:[#allocation97_spill] sm:$0xff] %v2703_v44  ;;  %v2708_v49 = vld [vmem:[%s4461_s2 + $0x378] sm:$0xff]  ;;  %v2713_v47 = vld [vmem:[%s4461_s2 + $0x380] sm:$0xff] }
  0x49   :  { %4612 = vst [vmem:[#allocation98_spill] sm:$0xff] %v2708_v49  ;;  %4613 = vst [vmem:[#allocation99_spill] sm:$0xff] %v2713_v47  ;;  %v2718_v41 = vld [vmem:[%s4461_s2 + $0x388] sm:$0xff]  ;;  %v2728_v44 = vld [vmem:[%s4461_s2 + $0x3b0] sm:$0xff] }
  0x4a   :  { %4614 = vst [vmem:[#allocation100_spill] sm:$0xff] %v2718_v41  ;;  %v2723_v50 = vld [vmem:[%s4461_s2 + $0x3a8] sm:$0xff]  ;;  %4616 = vst [vmem:[#allocation102_spill] sm:$0xff] %v2728_v44  ;;  %v2733_v49 = vld [vmem:[%s4461_s2 + $0x3b8] sm:$0xff] }
  0x4b   :  { %4615 = vst [vmem:[#allocation101_spill] sm:$0xff] %v2723_v50  ;;  %4617 = vst [vmem:[#allocation103_spill] sm:$0xff] %v2733_v49  ;;  %v2738_v47 = vld [vmem:[%s4461_s2 + $0x3d8] sm:$0xff]  ;;  %v2743_v41 = vld [vmem:[%s4461_s2 + $0x3e0] sm:$0xff] }
  0x4c   :  { %4618 = vst [vmem:[#allocation104_spill] sm:$0xff] %v2738_v47  ;;  %4619 = vst [vmem:[#allocation105_spill] sm:$0xff] %v2743_v41  ;;  %v2748_v50 = vld [vmem:[%s4461_s2 + $0x3e8] sm:$0xff]  ;;  %v2758_v49 = vld [vmem:[%s4461_s2 + $0x410] sm:$0xff] }
  0x4d   :  { %4620 = vst [vmem:[#allocation106_spill] sm:$0xff] %v2748_v50  ;;  %v2753_v44 = vld [vmem:[%s4461_s2 + $0x408] sm:$0xff]  ;;  %4622 = vst [vmem:[#allocation108_spill] sm:$0xff] %v2758_v49  ;;  %v2763_v47 = vld [vmem:[%s4461_s2 + $0x418] sm:$0xff] }
  0x4e   :  { %4621 = vst [vmem:[#allocation107_spill] sm:$0xff] %v2753_v44  ;;  %4623 = vst [vmem:[#allocation109_spill] sm:$0xff] %v2763_v47  ;;  %v2768_v41 = vld [vmem:[%s4461_s2 + $0x438] sm:$0xff]  ;;  %v2773_v50 = vld [vmem:[%s4461_s2 + $0x440] sm:$0xff] }
  0x4f   :  { %4624 = vst [vmem:[#allocation110_spill] sm:$0xff] %v2768_v41  ;;  %4625 = vst [vmem:[#allocation111_spill] sm:$0xff] %v2773_v50  ;;  %v2778_v44 = vld [vmem:[%s4461_s2 + $0x448] sm:$0xff]  ;;  %v2788_v47 = vld [vmem:[%s4461_s2 + $0x470] sm:$0xff] }
  0x50   :  { %4626 = vst [vmem:[#allocation112_spill] sm:$0xff] %v2778_v44  ;;  %v2783_v49 = vld [vmem:[%s4461_s2 + $0x468] sm:$0xff]  ;;  %4628 = vst [vmem:[#allocation114_spill] sm:$0xff] %v2788_v47  ;;  %v2793_v41 = vld [vmem:[%s4461_s2 + $0x478] sm:$0xff] }
  0x51   :  { %4627 = vst [vmem:[#allocation113_spill] sm:$0xff] %v2783_v49  ;;  %4629 = vst [vmem:[#allocation115_spill] sm:$0xff] %v2793_v41  ;;  %v2798_v50 = vld [vmem:[%s4461_s2 + $0x498] sm:$0xff]  ;;  %v2803_v44 = vld [vmem:[%s4461_s2 + $0x4a0] sm:$0xff] }
  0x52   :  { %4630 = vst [vmem:[#allocation116_spill] sm:$0xff] %v2798_v50  ;;  %4631 = vst [vmem:[#allocation117_spill] sm:$0xff] %v2803_v44  ;;  %v2808_v49 = vld [vmem:[%s4461_s2 + $0x4a8] sm:$0xff]  ;;  %v2818_v41 = vld [vmem:[%s4461_s2 + $0x4d0] sm:$0xff] }
  0x53   :  { %4632 = vst [vmem:[#allocation118_spill] sm:$0xff] %v2808_v49  ;;  %v2813_v47 = vld [vmem:[%s4461_s2 + $0x4c8] sm:$0xff]  ;;  %4634 = vst [vmem:[#allocation120_spill] sm:$0xff] %v2818_v41  ;;  %v2823_v50 = vld [vmem:[%s4461_s2 + $0x4d8] sm:$0xff] }
  0x54   :  { %4633 = vst [vmem:[#allocation119_spill] sm:$0xff] %v2813_v47  ;;  %4635 = vst [vmem:[#allocation121_spill] sm:$0xff] %v2823_v50  ;;  %v2828_v44 = vld [vmem:[%s4461_s2 + $0x4f8] sm:$0xff]  ;;  %v2833_v49 = vld [vmem:[%s4461_s2 + $0x500] sm:$0xff] }
  0x55   :  { %4636 = vst [vmem:[#allocation122_spill] sm:$0xff] %v2828_v44  ;;  %4637 = vst [vmem:[#allocation123_spill] sm:$0xff] %v2833_v49  ;;  %v2838_v47 = vld [vmem:[%s4461_s2 + $0x508] sm:$0xff]  ;;  %v2848_v50 = vld [vmem:[%s4461_s2 + $0x530] sm:$0xff] }
  0x56   :  { %4638 = vst [vmem:[#allocation124_spill] sm:$0xff] %v2838_v47  ;;  %v2843_v41 = vld [vmem:[%s4461_s2 + $0x528] sm:$0xff]  ;;  %4640 = vst [vmem:[#allocation126_spill] sm:$0xff] %v2848_v50  ;;  %v2853_v44 = vld [vmem:[%s4461_s2 + $0x538] sm:$0xff] }
  0x57   :  { %4639 = vst [vmem:[#allocation125_spill] sm:$0xff] %v2843_v41  ;;  %4641 = vst [vmem:[#allocation127_spill] sm:$0xff] %v2853_v44  ;;  %v2858_v49 = vld [vmem:[%s4461_s2 + $0x558] sm:$0xff]  ;;  %v2863_v47 = vld [vmem:[%s4461_s2 + $0x560] sm:$0xff] }
  0x58   :  { %4642 = vst [vmem:[#allocation128_spill] sm:$0xff] %v2858_v49  ;;  %4643 = vst [vmem:[#allocation129_spill] sm:$0xff] %v2863_v47  ;;  %v2868_v41 = vld [vmem:[%s4461_s2 + $0x568] sm:$0xff]  ;;  %v2878_v44 = vld [vmem:[%s4461_s2 + $0x590] sm:$0xff] }
  0x59   :  { %4644 = vst [vmem:[#allocation130_spill] sm:$0xff] %v2868_v41  ;;  %v2873_v50 = vld [vmem:[%s4461_s2 + $0x588] sm:$0xff]  ;;  %4646 = vst [vmem:[#allocation132_spill] sm:$0xff] %v2878_v44  ;;  %v2883_v49 = vld [vmem:[%s4461_s2 + $0x598] sm:$0xff] }
  0x5a   :  { %4645 = vst [vmem:[#allocation131_spill] sm:$0xff] %v2873_v50  ;;  %4647 = vst [vmem:[#allocation133_spill] sm:$0xff] %v2883_v49  ;;  %v2888_v47 = vld [vmem:[%s4461_s2 + $0x5b8] sm:$0xff]  ;;  %v2893_v41 = vld [vmem:[%s4461_s2 + $0x5c0] sm:$0xff] }
  0x5b   :  { %4648 = vst [vmem:[#allocation134_spill] sm:$0xff] %v2888_v47  ;;  %v2898_v50 = vld [vmem:[%s4461_s2 + $0x5c8] sm:$0xff]  ;;  %v2908_v49 = vld [vmem:[%s4461_s2 + $0x5f0] sm:$0xff]  ;;  %v2913_v47 = vld [vmem:[%s4461_s2 + $0x5f8] sm:$0xff] }
  0x5c   :  { %v2903_v44 = vld [vmem:[%s4461_s2 + $0x5e8] sm:$0xff] }
  0x5d   :  { %1929 = dma.done.wait [#allocation3], 32  }
  0x5e   :  { %1930 = vsyncadd [#allocation3], 4294967264 }
  0x5f   :  { %448 = sfence }
  0x60   :  { %579 = vxpose.xlu1.b32.start [1/16] %v1963_v1, 128  ;;  %547 = vxpose.xlu0.b32.start [1/16] %v1958_v0, 128  ;;  %v4649_v0 = vld [vmem:[#allocation7_spill] sm:$0xff]  ;;  %v4650_v1 = vld [vmem:[#allocation38_spill] sm:$0xff]  ;;  %s1027_s2 = sld [smem:[#allocation2]] }
  0x61   :  { %s1914_s29 = sld [smem:[#allocation2 + $0x80]] }
  0x62   :  { %s1913_s30 = sld [smem:[#allocation2 + $0x1]] }
  0x63   :  { %s1915_s4 = sld [smem:[#allocation2 + $0x81]] }
  0x64   :  { %580 = vxpose.xlu1.b32.cont [2/16] %v1978_v4, 128  ;;  %548 = vxpose.xlu0.b32.cont [2/16] %v1973_v3, 128  ;;  %v4652_v3 = vld [vmem:[#allocation41_spill] sm:$0xff] }
  0x68   :  { %581 = vxpose.xlu1.b32.cont [3/16] %v1993_v7, 128  ;;  %549 = vxpose.xlu0.b32.cont [3/16] %v1988_v6, 128  ;;  %v4654_v7 = vld [vmem:[#allocation11_spill] sm:$0xff] }
  0x6c   :  { %582 = vxpose.xlu1.b32.cont [4/16] %v2008_v10, 128  ;;  %550 = vxpose.xlu0.b32.cont [4/16] %v2003_v9, 128  ;;  %v4655_v9 = vld [vmem:[#allocation10_spill] sm:$0xff] }
  0x70   :  { %583 = vxpose.xlu1.b32.cont [5/16] %v2023_v13, 128  ;;  %551 = vxpose.xlu0.b32.cont [5/16] %v2018_v12, 128  ;;  %v4657_v13 = vld [vmem:[#allocation12_spill] sm:$0xff] }
  0x74   :  { %584 = vxpose.xlu1.b32.cont [6/16] %v2038_v16, 128  ;;  %552 = vxpose.xlu0.b32.cont [6/16] %v2033_v15, 128  ;;  %v4658_v15 = vld [vmem:[#allocation15_spill] sm:$0xff] }
  0x78   :  { %585 = vxpose.xlu1.b32.cont [7/16] %v2053_v19, 128  ;;  %553 = vxpose.xlu0.b32.cont [7/16] %v2048_v18, 128  ;;  %v4660_v19 = vld [vmem:[#allocation17_spill] sm:$0xff] }
  0x7c   :  { %586 = vxpose.xlu1.b32.cont [8/16] %v2068_v22, 128  ;;  %554 = vxpose.xlu0.b32.cont [8/16] %v2063_v21, 128  ;;  %v4661_v21 = vld [vmem:[#allocation16_spill] sm:$0xff] }
  0x80   :  { %587 = vxpose.xlu1.b32.cont [9/16] %v2083_v25, 128  ;;  %555 = vxpose.xlu0.b32.cont [9/16] %v2078_v24, 128  ;;  %v4663_v25 = vld [vmem:[#allocation18_spill] sm:$0xff] }
  0x84   :  { %588 = vxpose.xlu1.b32.cont [10/16] %v2098_v28, 128  ;;  %556 = vxpose.xlu0.b32.cont [10/16] %v2093_v27, 128  ;;  %v4664_v27 = vld [vmem:[#allocation21_spill] sm:$0xff] }
  0x88   :  { %589 = vxpose.xlu1.b32.cont [11/16] %v2113_v31, 128  ;;  %557 = vxpose.xlu0.b32.cont [11/16] %v2108_v30, 128  ;;  %v4666_v31 = vld [vmem:[#allocation23_spill] sm:$0xff] }
  0x8c   :  { %590 = vxpose.xlu1.b32.cont [12/16] %v2128_v34, 128  ;;  %558 = vxpose.xlu0.b32.cont [12/16] %v2123_v33, 128  ;;  %v4667_v33 = vld [vmem:[#allocation22_spill] sm:$0xff] }
  0x90   :  { %591 = vxpose.xlu1.b32.cont [13/16] %v2143_v37, 128  ;;  %559 = vxpose.xlu0.b32.cont [13/16] %v2138_v36, 128  ;;  %v4669_v37 = vld [vmem:[#allocation24_spill] sm:$0xff] }
  0x94   :  { %592 = vxpose.xlu1.b32.cont [14/16] %v2158_v40, 128  ;;  %560 = vxpose.xlu0.b32.cont [14/16] %v2153_v39, 128  ;;  %v4670_v39 = vld [vmem:[#allocation27_spill] sm:$0xff] }
  0x98   :  { %593 = vxpose.xlu1.b32.cont [15/16] %v2173_v43, 128  ;;  %561 = vxpose.xlu0.b32.cont [15/16] %v2168_v42, 128  ;;  %v4671_v42 = vld [vmem:[#allocation26_spill] sm:$0xff] }
  0x9c   :  { %594 = vxpose.xlu1.b32.end [16/16] %v2188_v46, 128  ;;  %562 = vxpose.xlu0.b32.end [16/16] %v2183_v45, 128  ;;  %v4672_v45 = vld [vmem:[#allocation29_spill] sm:$0xff] }
  0xa0   :  { %643 = vxpose.xlu1.b32.start [1/16] %v2198_v48, 128  ;;  %611 = vxpose.xlu0.b32.start [1/16] %v1968_v2, 128  ;;  %v4651_v2 = vld [vmem:[#allocation8_spill] sm:$0xff] }
  0xa1   :  { %v4673_v48 = vld [vmem:[#allocation28_spill] sm:$0xff] }
  0xa4   :  { %644 = vxpose.xlu1.b32.cont [2/16] %v2213_v51, 128  ;;  %612 = vxpose.xlu0.b32.cont [2/16] %v1983_v5, 128  ;;  %v4653_v5 = vld [vmem:[#allocation9_spill] sm:$0xff] }
  0xa8   :  { %645 = vxpose.xlu1.b32.cont [3/16] %v2228_v54, 128  ;;  %613 = vxpose.xlu0.b32.cont [3/16] %v1998_v8, 128  ;;  %v4675_v54 = vld [vmem:[#allocation30_spill] sm:$0xff] }
  0xac   :  { %646 = vxpose.xlu1.b32.cont [4/16] %v2243_v57, 128  ;;  %614 = vxpose.xlu0.b32.cont [4/16] %v2013_v11, 128  ;;  %v4656_v11 = vld [vmem:[#allocation13_spill] sm:$0xff] }
  0xb0   :  { %647 = vxpose.xlu1.b32.cont [5/16] %v2258_v60, 128  ;;  %615 = vxpose.xlu0.b32.cont [5/16] %v2028_v14, 128  ;;  %v4678_v60 = vld [vmem:[#allocation35_spill] sm:$0xff] }
  0xb4   :  { %648 = vxpose.xlu1.b32.cont [6/16] %v2273_v63, 128  ;;  %616 = vxpose.xlu0.b32.cont [6/16] %v2043_v17, 128  ;;  %v4659_v17 = vld [vmem:[#allocation14_spill] sm:$0xff] }
  0xb8   :  { %649 = vxpose.xlu1.b32.cont [7/16] %v2288_v61, 128  ;;  %617 = vxpose.xlu0.b32.cont [7/16] %v2058_v20, 128 }
  0xbc   :  { %650 = vxpose.xlu1.b32.cont [8/16] %v2303_v58, 128  ;;  %618 = vxpose.xlu0.b32.cont [8/16] %v2073_v23, 128  ;;  %v4662_v23 = vld [vmem:[#allocation19_spill] sm:$0xff]  ;;  %v4677_v58 = vld [vmem:[#allocation32_spill] sm:$0xff] }
  0xc0   :  { %651 = vxpose.xlu1.b32.cont [9/16] %v2318_v62, 128  ;;  %619 = vxpose.xlu0.b32.cont [9/16] %v2088_v26, 128  ;;  %v4679_v62 = vld [vmem:[#allocation34_spill] sm:$0xff] }
  0xc4   :  { %652 = vxpose.xlu1.b32.cont [10/16] %v2333_v59, 128  ;;  %620 = vxpose.xlu0.b32.cont [10/16] %v2103_v29, 128  ;;  %v4665_v29 = vld [vmem:[#allocation20_spill] sm:$0xff] }
  0xc8   :  { %653 = vxpose.xlu1.b32.cont [11/16] %v2348_v55, 128  ;;  %621 = vxpose.xlu0.b32.cont [11/16] %v2118_v32, 128 }
  0xcc   :  { %654 = vxpose.xlu1.b32.cont [12/16] %v2363_v56, 128  ;;  %622 = vxpose.xlu0.b32.cont [12/16] %v2133_v35, 128  ;;  %v4668_v35 = vld [vmem:[#allocation25_spill] sm:$0xff] }
  0xcd   :  { %v4676_v56 = vld [vmem:[#allocation33_spill] sm:$0xff] }
  0xd0   :  { %655 = vxpose.xlu1.b32.cont [13/16] %v2378_v52, 128  ;;  %623 = vxpose.xlu0.b32.cont [13/16] %v2148_v38, 128  ;;  %v4674_v52 = vld [vmem:[#allocation31_spill] sm:$0xff] }
  0xd4   :  { %656 = vxpose.xlu1.b32.cont [14/16] %v2393_v53, 128  ;;  %624 = vxpose.xlu0.b32.cont [14/16] %v4649_v0, 128  ;;  %v4680_v0 = vld [vmem:[#allocation37_spill] sm:$0xff] }
  0xd8   :  { %657 = vxpose.xlu1.b32.cont [15/16] %v4650_v1, 128  ;;  %625 = vxpose.xlu0.b32.cont [15/16] %v4651_v2, 128  ;;  %v4681_v2 = vld [vmem:[#allocation36_spill] sm:$0xff] }
  0xdc   :  { %658 = vxpose.xlu1.b32.end [16/16] %v4652_v3, 128  ;;  %v2978_v4 = vpop.trf.xlu1  ;;  %626 = vxpose.xlu0.b32.end [16/16] %v4653_v5, 128  ;;  %v2981_v6 = vpop.trf.xlu0  ;;  %v4682_v5 = vld [vmem:[#allocation40_spill] sm:$0xff] }
  0xe0   :  { %707 = vxpose.xlu1.b32.start [1/16] %v4654_v7, 128  ;;  %v2984_v8 = vpop.trf.xlu1  ;;  %675 = vxpose.xlu0.b32.start [1/16] %v4655_v9, 128  ;;  %v2987_v10 = vpop.trf.xlu0  ;;  %v4683_v9 = vld [vmem:[#allocation39_spill] sm:$0xff] }
  0xe4   :  { %708 = vxpose.xlu1.b32.cont [2/16] %v4656_v11, 128  ;;  %v2990_v12 = vpop.trf.xlu1  ;;  %676 = vxpose.xlu0.b32.cont [2/16] %v4657_v13, 128  ;;  %v2993_v14 = vpop.trf.xlu0  ;;  %v4684_v13 = vld [vmem:[#allocation43_spill] sm:$0xff] }
  0xe8   :  { %709 = vxpose.xlu1.b32.cont [3/16] %v4658_v15, 128  ;;  %v2996_v16 = vpop.trf.xlu1  ;;  %677 = vxpose.xlu0.b32.cont [3/16] %v4659_v17, 128  ;;  %v2999_v18 = vpop.trf.xlu0  ;;  %v4685_v17 = vld [vmem:[#allocation42_spill] sm:$0xff] }
  0xec   :  { %710 = vxpose.xlu1.b32.cont [4/16] %v4660_v19, 128  ;;  %v3002_v20 = vpop.trf.xlu1  ;;  %678 = vxpose.xlu0.b32.cont [4/16] %v4661_v21, 128  ;;  %v3005_v22 = vpop.trf.xlu0  ;;  %v4686_v21 = vld [vmem:[#allocation45_spill] sm:$0xff] }
  0xf0   :  { %711 = vxpose.xlu1.b32.cont [5/16] %v4662_v23, 128  ;;  %v3008_v24 = vpop.trf.xlu1  ;;  %679 = vxpose.xlu0.b32.cont [5/16] %v4663_v25, 128  ;;  %v3011_v26 = vpop.trf.xlu0  ;;  %v4687_v25 = vld [vmem:[#allocation44_spill] sm:$0xff] }
  0xf4   :  { %712 = vxpose.xlu1.b32.cont [6/16] %v4664_v27, 128  ;;  %v3014_v28 = vpop.trf.xlu1  ;;  %680 = vxpose.xlu0.b32.cont [6/16] %v4665_v29, 128  ;;  %v3017_v30 = vpop.trf.xlu0  ;;  %v4688_v29 = vld [vmem:[#allocation48_spill] sm:$0xff] }
  0xf8   :  { %713 = vxpose.xlu1.b32.cont [7/16] %v4666_v31, 128  ;;  %v3020_v32 = vpop.trf.xlu1  ;;  %681 = vxpose.xlu0.b32.cont [7/16] %v4667_v33, 128  ;;  %v3023_v34 = vpop.trf.xlu0  ;;  %v4689_v33 = vld [vmem:[#allocation47_spill] sm:$0xff] }
  0xfc   :  { %714 = vxpose.xlu1.b32.cont [8/16] %v4668_v35, 128  ;;  %v3026_v36 = vpop.trf.xlu1  ;;  %682 = vxpose.xlu0.b32.cont [8/16] %v4669_v37, 128  ;;  %v3029_v38 = vpop.trf.xlu0  ;;  %v4690_v37 = vld [vmem:[#allocation51_spill] sm:$0xff] }
 0x100   :  { %715 = vxpose.xlu1.b32.cont [9/16] %v4670_v39, 128  ;;  %v3032_v40 = vpop.trf.xlu1  ;;  %683 = vxpose.xlu0.b32.cont [9/16] %v4671_v42, 128  ;;  %v3035_v43 = vpop.trf.xlu0  ;;  %v4692_v42 = vld [vmem:[#allocation50_spill] sm:$0xff] }
 0x104   :  { %716 = vxpose.xlu1.b32.cont [10/16] %v4672_v45, 128  ;;  %v3038_v46 = vpop.trf.xlu1  ;;  %684 = vxpose.xlu0.b32.cont [10/16] %v4673_v48, 128  ;;  %v3041_v51 = vpop.trf.xlu0  ;;  %v4694_v48 = vld [vmem:[#allocation54_spill] sm:$0xff] }
 0x108   :  { %717 = vxpose.xlu1.b32.cont [11/16] %v4674_v52, 128  ;;  %v3044_v53 = vpop.trf.xlu1  ;;  %685 = vxpose.xlu0.b32.cont [11/16] %v4675_v54, 128  ;;  %v3047_v55 = vpop.trf.xlu0  ;;  %v4696_v54 = vld [vmem:[#allocation53_spill] sm:$0xff] }
 0x10c   :  { %718 = vxpose.xlu1.b32.cont [12/16] %v4676_v56, 128  ;;  %v3050_v57 = vpop.trf.xlu1  ;;  %686 = vxpose.xlu0.b32.cont [12/16] %v4677_v58, 128  ;;  %v3053_v59 = vpop.trf.xlu0  ;;  %v4698_v58 = vld [vmem:[#allocation57_spill] sm:$0xff] }
 0x110   :  { %719 = vxpose.xlu1.b32.cont [13/16] %v4678_v60, 128  ;;  %v3056_v61 = vpop.trf.xlu1  ;;  %687 = vxpose.xlu0.b32.cont [13/16] %v4679_v62, 128  ;;  %v3059_v63 = vpop.trf.xlu0  ;;  %v4700_v62 = vld [vmem:[#allocation56_spill] sm:$0xff] }
 0x114   :  { %720 = vxpose.xlu1.b32.cont [14/16] %v4680_v0, 128  ;;  %v3062_v1 = vpop.trf.xlu1  ;;  %688 = vxpose.xlu0.b32.cont [14/16] %v4681_v2, 128  ;;  %v3065_v3 = vpop.trf.xlu0  ;;  %v4702_v2 = vld [vmem:[#allocation60_spill] sm:$0xff] }
 0x118   :  { %721 = vxpose.xlu1.b32.cont [15/16] %v4682_v5, 128  ;;  %v3068_v7 = vpop.trf.xlu1  ;;  %689 = vxpose.xlu0.b32.cont [15/16] %v4683_v9, 128  ;;  %v3071_v11 = vpop.trf.xlu0  ;;  %v4704_v9 = vld [vmem:[#allocation59_spill] sm:$0xff] }
 0x11c   :  { %722 = vxpose.xlu1.b32.end [16/16] %v4684_v13, 128  ;;  %v3074_v15 = vpop.trf.xlu1  ;;  %690 = vxpose.xlu0.b32.end [16/16] %v4685_v17, 128  ;;  %v3077_v19 = vpop.trf.xlu0  ;;  %v4706_v17 = vld [vmem:[#allocation63_spill] sm:$0xff] }
 0x120   :  { %867 = vxpose.xlu1.b32.start [1/16] %v4686_v21, 128  ;;  %v3080_v23 = vpop.trf.xlu1  ;;  %835 = vxpose.xlu0.b32.start [1/16] %v4687_v25, 128  ;;  %v3083_v27 = vpop.trf.xlu0  ;;  %v4708_v25 = vld [vmem:[#allocation62_spill] sm:$0xff] }
 0x124   :  { %868 = vxpose.xlu1.b32.cont [2/16] %v4688_v29, 128  ;;  %v3086_v31 = vpop.trf.xlu1  ;;  %836 = vxpose.xlu0.b32.cont [2/16] %v4689_v33, 128  ;;  %v3089_v35 = vpop.trf.xlu0  ;;  %v4710_v33 = vld [vmem:[#allocation66_spill] sm:$0xff] }
 0x128   :  { %869 = vxpose.xlu1.b32.cont [3/16] %v4690_v37, 128  ;;  %v3092_v39 = vpop.trf.xlu1  ;;  %837 = vxpose.xlu0.b32.cont [3/16] %v4692_v42, 128  ;;  %v3095_v45 = vpop.trf.xlu0  ;;  %v4712_v42 = vld [vmem:[#allocation65_spill] sm:$0xff] }
 0x129   :  { %4691 = vst [vmem:[#allocation7_spill] sm:$0xff] %v3092_v39  ;;  %4693 = vst [vmem:[#allocation38_spill] sm:$0xff] %v3095_v45 }
 0x12c   :  { %870 = vxpose.xlu1.b32.cont [4/16] %v4694_v48, 128  ;;  %v3098_v52 = vpop.trf.xlu1  ;;  %838 = vxpose.xlu0.b32.cont [4/16] %v4696_v54, 128  ;;  %v3101_v56 = vpop.trf.xlu0  ;;  %v4714_v54 = vld [vmem:[#allocation69_spill] sm:$0xff] }
 0x12d   :  { %4695 = vst [vmem:[#allocation8_spill] sm:$0xff] %v3098_v52  ;;  %4697 = vst [vmem:[#allocation41_spill] sm:$0xff] %v3101_v56  ;;  %v4807_v52 = vld [vmem:[#allocation94_spill] sm:$0xff] }
 0x130   :  { %871 = vxpose.xlu1.b32.cont [5/16] %v4698_v58, 128  ;;  %v3104_v60 = vpop.trf.xlu1  ;;  %839 = vxpose.xlu0.b32.cont [5/16] %v4700_v62, 128  ;;  %v3107_v0 = vpop.trf.xlu0  ;;  %v4716_v62 = vld [vmem:[#allocation68_spill] sm:$0xff] }
 0x131   :  { %4699 = vst [vmem:[#allocation9_spill] sm:$0xff] %v3104_v60  ;;  %4701 = vst [vmem:[#allocation11_spill] sm:$0xff] %v3107_v0 }
 0x134   :  { %872 = vxpose.xlu1.b32.cont [6/16] %v4702_v2, 128  ;;  %v3110_v5 = vpop.trf.xlu1  ;;  %840 = vxpose.xlu0.b32.cont [6/16] %v4704_v9, 128  ;;  %v3113_v13 = vpop.trf.xlu0  ;;  %v4718_v9 = vld [vmem:[#allocation72_spill] sm:$0xff] }
 0x135   :  { %4703 = vst [vmem:[#allocation10_spill] sm:$0xff] %v3110_v5  ;;  %4705 = vst [vmem:[#allocation13_spill] sm:$0xff] %v3113_v13 }
 0x138   :  { %873 = vxpose.xlu1.b32.cont [7/16] %v4706_v17, 128  ;;  %v3116_v21 = vpop.trf.xlu1  ;;  %841 = vxpose.xlu0.b32.cont [7/16] %v4708_v25, 128  ;;  %v3119_v29 = vpop.trf.xlu0  ;;  %v4720_v25 = vld [vmem:[#allocation71_spill] sm:$0xff] }
 0x139   :  { %4707 = vst [vmem:[#allocation12_spill] sm:$0xff] %v3116_v21  ;;  %4709 = vst [vmem:[#allocation15_spill] sm:$0xff] %v3119_v29 }
 0x13c   :  { %874 = vxpose.xlu1.b32.cont [8/16] %v4710_v33, 128  ;;  %v3122_v37 = vpop.trf.xlu1  ;;  %842 = vxpose.xlu0.b32.cont [8/16] %v4712_v42, 128  ;;  %v3125_v48 = vpop.trf.xlu0 }
 0x13d   :  { %4711 = vst [vmem:[#allocation14_spill] sm:$0xff] %v3122_v37  ;;  %4713 = vst [vmem:[#allocation17_spill] sm:$0xff] %v3125_v48  ;;  %v4722_v37 = vld [vmem:[#allocation75_spill] sm:$0xff]  ;;  %v4724_v48 = vld [vmem:[#allocation74_spill] sm:$0xff] }
 0x140   :  { %875 = vxpose.xlu1.b32.cont [9/16] %v4714_v54, 128  ;;  %v3128_v58 = vpop.trf.xlu1  ;;  %843 = vxpose.xlu0.b32.cont [9/16] %v4716_v62, 128  ;;  %v3131_v2 = vpop.trf.xlu0 }
 0x141   :  { %4715 = vst [vmem:[#allocation16_spill] sm:$0xff] %v3128_v58  ;;  %4717 = vst [vmem:[#allocation19_spill] sm:$0xff] %v3131_v2  ;;  %v4726_v58 = vld [vmem:[#allocation78_spill] sm:$0xff]  ;;  %v4728_v2 = vld [vmem:[#allocation77_spill] sm:$0xff] }
 0x144   :  { %876 = vxpose.xlu1.b32.cont [10/16] %v4718_v9, 128  ;;  %v3134_v17 = vpop.trf.xlu1  ;;  %844 = vxpose.xlu0.b32.cont [10/16] %v4720_v25, 128  ;;  %v3137_v33 = vpop.trf.xlu0 }
 0x145   :  { %4719 = vst [vmem:[#allocation18_spill] sm:$0xff] %v3134_v17  ;;  %4721 = vst [vmem:[#allocation21_spill] sm:$0xff] %v3137_v33  ;;  %v4730_v17 = vld [vmem:[#allocation81_spill] sm:$0xff]  ;;  %v4732_v33 = vld [vmem:[#allocation80_spill] sm:$0xff] }
 0x148   :  { %877 = vxpose.xlu1.b32.cont [11/16] %v4722_v37, 128  ;;  %v3140_v42 = vpop.trf.xlu1  ;;  %845 = vxpose.xlu0.b32.cont [11/16] %v4724_v48, 128  ;;  %v3143_v54 = vpop.trf.xlu0 }
 0x149   :  { %4723 = vst [vmem:[#allocation20_spill] sm:$0xff] %v3140_v42  ;;  %4725 = vst [vmem:[#allocation23_spill] sm:$0xff] %v3143_v54  ;;  %v4734_v42 = vld [vmem:[#allocation84_spill] sm:$0xff]  ;;  %v4736_v54 = vld [vmem:[#allocation83_spill] sm:$0xff] }
 0x14c   :  { %878 = vxpose.xlu1.b32.cont [12/16] %v4726_v58, 128  ;;  %v3146_v62 = vpop.trf.xlu1  ;;  %846 = vxpose.xlu0.b32.cont [12/16] %v4728_v2, 128  ;;  %v3149_v9 = vpop.trf.xlu0 }
 0x14d   :  { %4727 = vst [vmem:[#allocation22_spill] sm:$0xff] %v3146_v62  ;;  %4729 = vst [vmem:[#allocation25_spill] sm:$0xff] %v3149_v9  ;;  %v4738_v62 = vld [vmem:[#allocation87_spill] sm:$0xff]  ;;  %v4740_v9 = vld [vmem:[#allocation86_spill] sm:$0xff] }
 0x150   :  { %879 = vxpose.xlu1.b32.cont [13/16] %v4730_v17, 128  ;;  %v3152_v25 = vpop.trf.xlu1  ;;  %847 = vxpose.xlu0.b32.cont [13/16] %v4732_v33, 128  ;;  %v3155_v37 = vpop.trf.xlu0 }
 0x151   :  { %4731 = vst [vmem:[#allocation24_spill] sm:$0xff] %v3152_v25  ;;  %4733 = vst [vmem:[#allocation27_spill] sm:$0xff] %v3155_v37  ;;  %v4742_v25 = vld [vmem:[#allocation90_spill] sm:$0xff]  ;;  %v4744_v37 = vld [vmem:[#allocation89_spill] sm:$0xff] }
 0x154   :  { %880 = vxpose.xlu1.b32.cont [14/16] %v4734_v42, 128  ;;  %v3158_v48 = vpop.trf.xlu1  ;;  %848 = vxpose.xlu0.b32.cont [14/16] %v4736_v54, 128  ;;  %v3161_v58 = vpop.trf.xlu0 }
 0x155   :  { %4735 = vst [vmem:[#allocation26_spill] sm:$0xff] %v3158_v48  ;;  %4737 = vst [vmem:[#allocation29_spill] sm:$0xff] %v3161_v58  ;;  %v4746_v48 = vld [vmem:[#allocation92_spill] sm:$0xff]  ;;  %v4748_v58 = vld [vmem:[#allocation46_spill] sm:$0xff] }
 0x158   :  { %881 = vxpose.xlu1.b32.cont [15/16] %v4738_v62, 128  ;;  %v3164_v2 = vpop.trf.xlu1  ;;  %849 = vxpose.xlu0.b32.cont [15/16] %v4740_v9, 128  ;;  %v3167_v17 = vpop.trf.xlu0 }
 0x159   :  { %4739 = vst [vmem:[#allocation28_spill] sm:$0xff] %v3164_v2  ;;  %4741 = vst [vmem:[#allocation31_spill] sm:$0xff] %v3167_v17  ;;  %v4750_v2 = vld [vmem:[#allocation95_spill] sm:$0xff]  ;;  %v4752_v17 = vld [vmem:[#allocation49_spill] sm:$0xff] }
 0x15c   :  { %882 = vxpose.xlu1.b32.end [16/16] %v4742_v25, 128  ;;  %v3170_v33 = vpop.trf.xlu1  ;;  %850 = vxpose.xlu0.b32.end [16/16] %v4744_v37, 128  ;;  %v3173_v42 = vpop.trf.xlu0 }
 0x15d   :  { %4743 = vst [vmem:[#allocation30_spill] sm:$0xff] %v3170_v33  ;;  %4745 = vst [vmem:[#allocation33_spill] sm:$0xff] %v3173_v42  ;;  %v4754_v33 = vld [vmem:[#allocation98_spill] sm:$0xff]  ;;  %v4756_v42 = vld [vmem:[#allocation52_spill] sm:$0xff] }
 0x160   :  { %931 = vxpose.xlu1.b32.start [1/16] %v4746_v48, 128  ;;  %v3176_v54 = vpop.trf.xlu1  ;;  %899 = vxpose.xlu0.b32.start [1/16] %v4748_v58, 128  ;;  %v3179_v62 = vpop.trf.xlu0 }
 0x161   :  { %4747 = vst [vmem:[#allocation32_spill] sm:$0xff] %v3176_v54  ;;  %4749 = vst [vmem:[#allocation35_spill] sm:$0xff] %v3179_v62  ;;  %v4758_v54 = vld [vmem:[#allocation101_spill] sm:$0xff]  ;;  %v4760_v62 = vld [vmem:[#allocation55_spill] sm:$0xff] }
 0x164   :  { %932 = vxpose.xlu1.b32.cont [2/16] %v4750_v2, 128  ;;  %v3182_v9 = vpop.trf.xlu1  ;;  %900 = vxpose.xlu0.b32.cont [2/16] %v4752_v17, 128  ;;  %v3185_v25 = vpop.trf.xlu0 }
 0x165   :  { %4751 = vst [vmem:[#allocation34_spill] sm:$0xff] %v3182_v9  ;;  %4753 = vst [vmem:[#allocation37_spill] sm:$0xff] %v3185_v25  ;;  %v4762_v9 = vld [vmem:[#allocation104_spill] sm:$0xff]  ;;  %v4764_v25 = vld [vmem:[#allocation58_spill] sm:$0xff] }
 0x168   :  { %933 = vxpose.xlu1.b32.cont [3/16] %v4754_v33, 128  ;;  %v3188_v37 = vpop.trf.xlu1  ;;  %901 = vxpose.xlu0.b32.cont [3/16] %v4756_v42, 128  ;;  %v3191_v48 = vpop.trf.xlu0 }
 0x169   :  { %4755 = vst [vmem:[#allocation36_spill] sm:$0xff] %v3188_v37  ;;  %4757 = vst [vmem:[#allocation40_spill] sm:$0xff] %v3191_v48  ;;  %v4766_v37 = vld [vmem:[#allocation107_spill] sm:$0xff]  ;;  %v4768_v48 = vld [vmem:[#allocation61_spill] sm:$0xff] }
 0x16c   :  { %934 = vxpose.xlu1.b32.cont [4/16] %v4758_v54, 128  ;;  %v3194_v58 = vpop.trf.xlu1  ;;  %902 = vxpose.xlu0.b32.cont [4/16] %v4760_v62, 128  ;;  %v3197_v2 = vpop.trf.xlu0 }
 0x16d   :  { %4759 = vst [vmem:[#allocation39_spill] sm:$0xff] %v3194_v58  ;;  %4761 = vst [vmem:[#allocation43_spill] sm:$0xff] %v3197_v2  ;;  %v4770_v58 = vld [vmem:[#allocation110_spill] sm:$0xff]  ;;  %v4772_v2 = vld [vmem:[#allocation64_spill] sm:$0xff] }
 0x170   :  { %935 = vxpose.xlu1.b32.cont [5/16] %v4762_v9, 128  ;;  %v3200_v17 = vpop.trf.xlu1  ;;  %903 = vxpose.xlu0.b32.cont [5/16] %v4764_v25, 128  ;;  %v3203_v33 = vpop.trf.xlu0 }
 0x171   :  { %4763 = vst [vmem:[#allocation42_spill] sm:$0xff] %v3200_v17  ;;  %4765 = vst [vmem:[#allocation45_spill] sm:$0xff] %v3203_v33  ;;  %v4774_v17 = vld [vmem:[#allocation113_spill] sm:$0xff]  ;;  %v4776_v33 = vld [vmem:[#allocation67_spill] sm:$0xff] }
 0x174   :  { %936 = vxpose.xlu1.b32.cont [6/16] %v4766_v37, 128  ;;  %v3206_v42 = vpop.trf.xlu1  ;;  %904 = vxpose.xlu0.b32.cont [6/16] %v4768_v48, 128  ;;  %v3209_v54 = vpop.trf.xlu0 }
 0x175   :  { %4767 = vst [vmem:[#allocation44_spill] sm:$0xff] %v3206_v42  ;;  %4769 = vst [vmem:[#allocation48_spill] sm:$0xff] %v3209_v54  ;;  %v4778_v42 = vld [vmem:[#allocation116_spill] sm:$0xff]  ;;  %v4780_v54 = vld [vmem:[#allocation70_spill] sm:$0xff] }
 0x178   :  { %937 = vxpose.xlu1.b32.cont [7/16] %v4770_v58, 128  ;;  %v3212_v62 = vpop.trf.xlu1  ;;  %905 = vxpose.xlu0.b32.cont [7/16] %v4772_v2, 128  ;;  %v3215_v9 = vpop.trf.xlu0 }
 0x179   :  { %4771 = vst [vmem:[#allocation47_spill] sm:$0xff] %v3212_v62  ;;  %4773 = vst [vmem:[#allocation51_spill] sm:$0xff] %v3215_v9  ;;  %v4782_v62 = vld [vmem:[#allocation119_spill] sm:$0xff]  ;;  %v4784_v9 = vld [vmem:[#allocation73_spill] sm:$0xff] }
 0x17c   :  { %938 = vxpose.xlu1.b32.cont [8/16] %v4774_v17, 128  ;;  %v3218_v25 = vpop.trf.xlu1  ;;  %906 = vxpose.xlu0.b32.cont [8/16] %v4776_v33, 128  ;;  %v3221_v37 = vpop.trf.xlu0 }
 0x17d   :  { %4775 = vst [vmem:[#allocation50_spill] sm:$0xff] %v3218_v25  ;;  %4777 = vst [vmem:[#allocation54_spill] sm:$0xff] %v3221_v37  ;;  %v4786_v25 = vld [vmem:[#allocation122_spill] sm:$0xff]  ;;  %v4788_v37 = vld [vmem:[#allocation76_spill] sm:$0xff] }
 0x180   :  { %939 = vxpose.xlu1.b32.cont [9/16] %v4778_v42, 128  ;;  %v3224_v48 = vpop.trf.xlu1  ;;  %907 = vxpose.xlu0.b32.cont [9/16] %v4780_v54, 128  ;;  %v3227_v58 = vpop.trf.xlu0 }
 0x181   :  { %4779 = vst [vmem:[#allocation53_spill] sm:$0xff] %v3224_v48  ;;  %4781 = vst [vmem:[#allocation57_spill] sm:$0xff] %v3227_v58  ;;  %v4790_v48 = vld [vmem:[#allocation125_spill] sm:$0xff]  ;;  %v4792_v58 = vld [vmem:[#allocation79_spill] sm:$0xff] }
 0x184   :  { %940 = vxpose.xlu1.b32.cont [10/16] %v4782_v62, 128  ;;  %v3230_v2 = vpop.trf.xlu1  ;;  %908 = vxpose.xlu0.b32.cont [10/16] %v4784_v9, 128  ;;  %v3233_v17 = vpop.trf.xlu0  ;;  %v4794_v9 = vld [vmem:[#allocation128_spill] sm:$0xff] }
 0x185   :  { %4783 = vst [vmem:[#allocation56_spill] sm:$0xff] %v3230_v2  ;;  %4785 = vst [vmem:[#allocation60_spill] sm:$0xff] %v3233_v17  ;;  %v3269_v2 = vstv %s1913_s30 }
 0x188   :  { %941 = vxpose.xlu1.b32.cont [11/16] %v4786_v25, 128  ;;  %v3236_v33 = vpop.trf.xlu1  ;;  %909 = vxpose.xlu0.b32.cont [11/16] %v4788_v37, 128  ;;  %v3239_v42 = vpop.trf.xlu0  ;;  %v4796_v25 = vld [vmem:[#allocation82_spill] sm:$0xff]  ;;  %v4798_v37 = vld [vmem:[#allocation131_spill] sm:$0xff] }
 0x189   :  { %4787 = vst [vmem:[#allocation59_spill] sm:$0xff] %v3236_v33  ;;  %4789 = vst [vmem:[#allocation63_spill] sm:$0xff] %v3239_v42  ;;  %v4802_v42 = vld [vmem:[#allocation134_spill] sm:$0xff] }
 0x18c   :  { %942 = vxpose.xlu1.b32.cont [12/16] %v4790_v48, 128  ;;  %v3242_v54 = vpop.trf.xlu1  ;;  %910 = vxpose.xlu0.b32.cont [12/16] %v4792_v58, 128  ;;  %v3245_v62 = vpop.trf.xlu0 }
 0x18d   :  { %4791 = vst [vmem:[#allocation62_spill] sm:$0xff] %v3242_v54  ;;  %4793 = vst [vmem:[#allocation66_spill] sm:$0xff] %v3245_v62  ;;  %v4800_v54 = vld [vmem:[#allocation85_spill] sm:$0xff]  ;;  %v3259_v62 = vstv %s1027_s2 }
 0x18e   :  { %v1063_v5 = vmul.f32 %v3259_v62, %v2984_v8 }
 0x190   :  { %943 = vxpose.xlu1.b32.cont [13/16] %v4794_v9, 128  ;;  %v3248_v17 = vpop.trf.xlu1  ;;  %911 = vxpose.xlu0.b32.cont [13/16] %v4796_v25, 128  ;;  %v3251_v33 = vpop.trf.xlu0 }
 0x191   :  { %4795 = vst [vmem:[#allocation65_spill] sm:$0xff] %v3248_v17  ;;  %4797 = vst [vmem:[#allocation69_spill] sm:$0xff] %v3251_v33  ;;  %v4804_v17 = vld [vmem:[#allocation88_spill] sm:$0xff]  ;;  %v3267_v33 = vstv %s1914_s29 }
 0x194   :  { %944 = vxpose.xlu1.b32.cont [14/16] %v4798_v37, 128  ;;  %v3254_v48 = vpop.trf.xlu1  ;;  %912 = vxpose.xlu0.b32.cont [14/16] %v4800_v54, 128  ;;  %v3257_v58 = vpop.trf.xlu0  ;;  %v3271_v37 = vstv %s1915_s4  ;;  %v1061_v54 = vmul.f32 %v3259_v62, %v2978_v4 }
 0x195   :  { %4799 = vst [vmem:[#allocation68_spill] sm:$0xff] %v3254_v48  ;;  %4801 = vst [vmem:[#allocation72_spill] sm:$0xff] %v3257_v58  ;;  %v1449_v58 = vmul.f32 %v3267_v33, %v2978_v4 }
 0x198   :  { %945 = vxpose.xlu1.b32.cont [15/16] %v4802_v42, 128  ;;  %v3262_v9 = vpop.trf.xlu1  ;;  %913 = vxpose.xlu0.b32.cont [15/16] %v4804_v17, 128  ;;  %v3265_v25 = vpop.trf.xlu0  ;;  %v1029_v42 = vmul.f32 %v3259_v62, %v2981_v6  ;;  %v1417_v17 = vmul.f32 %v3267_v33, %v2981_v6 }
 0x199   :  { %4803 = vst [vmem:[#allocation71_spill] sm:$0xff] %v3262_v9  ;;  %4805 = vst [vmem:[#allocation75_spill] sm:$0xff] %v3265_v25  ;;  %v4806_v9 = vld [vmem:[#allocation91_spill] sm:$0xff] }
 0x19c   :  { %946 = vxpose.xlu1.b32.end [16/16] %v2903_v44, 128  ;;  %v883_v25 = vpop.trf.xlu1  ;;  %914 = vxpose.xlu0.b32.end [16/16] %v4806_v9, 128  ;;  %v851_v48 = vpop.trf.xlu0  ;;  %v1451_v44 = vmul.f32 %v3267_v33, %v2984_v8  ;;  %v1031_v9 = vmul.f32 %v3259_v62, %v2987_v10 }
 0x19d   :  { %v1159_v29 = vmul.f32 %v3269_v2, %v883_v25  ;;  %v1547_v21 = vmul.f32 %v3271_v37, %v883_v25  ;;  %v1127_v13 = vmul.f32 %v3269_v2, %v851_v48  ;;  %v1515_v4 = vmul.f32 %v3271_v37, %v851_v48  ;;  %v4808_v48 = vld [vmem:[#allocation93_spill] sm:$0xff] }
 0x19e   :  { %v1419_v25 = vmul.f32 %v3267_v33, %v2987_v10 }
 0x19f   :  { %v1255_v0 = vadd.f32 %v1159_v29, %v1061_v54  ;;  %v1643_v60 = vadd.f32 %v1547_v21, %v1449_v58  ;;  %v1223_v6 = vadd.f32 %v1127_v13, %v1029_v42  ;;  %v1611_v56 = vadd.f32 %v1515_v4, %v1417_v17  ;;  %v4809_v42 = vld [vmem:[#allocation97_spill] sm:$0xff] }
 0x1a0   :  { %995 = vxpose.xlu1.b32.start [1/16] %v4807_v52, 128  ;;  %v884_v45 = vpop.trf.xlu1  ;;  %963 = vxpose.xlu0.b32.start [1/16] %v4808_v48, 128  ;;  %v852_v39 = vpop.trf.xlu0  ;;  %v1065_v13 = vmul.f32 %v3259_v62, %v2990_v12  ;;  %v1453_v54 = vmul.f32 %v3267_v33, %v2990_v12 }
 0x1a1   :  { %1351 = vst [vmem:[%s4462_s3 + $0x200] sm:$0xff] %v1255_v0  ;;  %1739 = vst [vmem:[%s4462_s3 + $0x210] sm:$0xff] %v1643_v60  ;;  %v1161_v8 = vmul.f32 %v3269_v2, %v884_v45  ;;  %v1549_v10 = vmul.f32 %v3271_v37, %v884_v45  ;;  %v1129_v52 = vmul.f32 %v3269_v2, %v852_v39 }
 0x1a2   :  { %1319 = vst [vmem:[%s4462_s3] sm:$0xff] %v1223_v6  ;;  %1707 = vst [vmem:[%s4462_s3 + $0x10] sm:$0xff] %v1611_v56  ;;  %v1517_v0 = vmul.f32 %v3271_v37, %v852_v39  ;;  %v1033_v56 = vmul.f32 %v3259_v62, %v2993_v14  ;;  %v1421_v45 = vmul.f32 %v3267_v33, %v2993_v14  ;;  %v4810_v39 = vld [vmem:[#allocation96_spill] sm:$0xff] }
 0x1a3   :  { %v1257_v60 = vadd.f32 %v1161_v8, %v1063_v5  ;;  %v1645_v21 = vadd.f32 %v1549_v10, %v1451_v44  ;;  %v1225_v29 = vadd.f32 %v1129_v52, %v1031_v9  ;;  %v1067_v44 = vmul.f32 %v3259_v62, %v2996_v16 }
 0x1a4   :  { %v1613_v58 = vadd.f32 %v1517_v0, %v1419_v25  ;;  %996 = vxpose.xlu1.b32.cont [2/16] %v4809_v42, 128  ;;  %v885_v17 = vpop.trf.xlu1  ;;  %964 = vxpose.xlu0.b32.cont [2/16] %v4810_v39, 128  ;;  %v853_v4 = vpop.trf.xlu0  ;;  %v1455_v10 = vmul.f32 %v3267_v33, %v2996_v16  ;;  %v1035_v52 = vmul.f32 %v3259_v62, %v2999_v18 }
 0x1a5   :  { %1353 = vst [vmem:[%s4462_s3 + $0x220] sm:$0xff] %v1257_v60  ;;  %1741 = vst [vmem:[%s4462_s3 + $0x230] sm:$0xff] %v1645_v21  ;;  %v1163_v12 = vmul.f32 %v3269_v2, %v885_v17  ;;  %v1551_v14 = vmul.f32 %v3271_v37, %v885_v17  ;;  %v1131_v5 = vmul.f32 %v3269_v2, %v853_v4  ;;  %v4811_v60 = vld [vmem:[#allocation100_spill] sm:$0xff] }
 0x1a6   :  { %1321 = vst [vmem:[%s4462_s3 + $0x20] sm:$0xff] %v1225_v29  ;;  %1709 = vst [vmem:[%s4462_s3 + $0x30] sm:$0xff] %v1613_v58  ;;  %v1519_v6 = vmul.f32 %v3271_v37, %v853_v4  ;;  %v1423_v0 = vmul.f32 %v3267_v33, %v2999_v18  ;;  %v4812_v29 = vld [vmem:[#allocation99_spill] sm:$0xff]  ;;  %v1457_v4 = vmul.f32 %v3267_v33, %v3002_v20 }
 0x1a7   :  { %v1259_v9 = vadd.f32 %v1163_v12, %v1065_v13  ;;  %v1647_v25 = vadd.f32 %v1551_v14, %v1453_v54  ;;  %v1227_v48 = vadd.f32 %v1131_v5, %v1033_v56  ;;  %v1069_v56 = vmul.f32 %v3259_v62, %v3002_v20  ;;  %v4813_v5 = vld [vmem:[#allocation103_spill] sm:$0xff] }
 0x1a8   :  { %v1615_v8 = vadd.f32 %v1519_v6, %v1421_v45  ;;  %997 = vxpose.xlu1.b32.cont [3/16] %v4811_v60, 128  ;;  %v886_v21 = vpop.trf.xlu1  ;;  %965 = vxpose.xlu0.b32.cont [3/16] %v4812_v29, 128  ;;  %v854_v58 = vpop.trf.xlu0  ;;  %v1037_v12 = vmul.f32 %v3259_v62, %v3005_v22  ;;  %v1425_v14 = vmul.f32 %v3267_v33, %v3005_v22 }
 0x1a9   :  { %1355 = vst [vmem:[%s4462_s3 + $0x240] sm:$0xff] %v1259_v9  ;;  %1743 = vst [vmem:[%s4462_s3 + $0x250] sm:$0xff] %v1647_v25  ;;  %v1165_v16 = vmul.f32 %v3269_v2, %v886_v21  ;;  %v1553_v18 = vmul.f32 %v3271_v37, %v886_v21  ;;  %v1133_v13 = vmul.f32 %v3269_v2, %v854_v58  ;;  %v4814_v9 = vld [vmem:[#allocation102_spill] sm:$0xff] }
 0x1aa   :  { %1323 = vst [vmem:[%s4462_s3 + $0x40] sm:$0xff] %v1227_v48  ;;  %1711 = vst [vmem:[%s4462_s3 + $0x50] sm:$0xff] %v1615_v8  ;;  %v1521_v54 = vmul.f32 %v3271_v37, %v854_v58  ;;  %v1071_v8 = vmul.f32 %v3259_v62, %v3008_v24  ;;  %v1459_v21 = vmul.f32 %v3267_v33, %v3008_v24 }
 0x1ab   :  { %v1261_v45 = vadd.f32 %v1165_v16, %v1067_v44  ;;  %v1649_v42 = vadd.f32 %v1553_v18, %v1455_v10  ;;  %v1229_v17 = vadd.f32 %v1133_v13, %v1035_v52  ;;  %v1039_v29 = vmul.f32 %v3259_v62, %v3011_v26  ;;  %v4815_v16 = vld [vmem:[#allocation106_spill] sm:$0xff]  ;;  %v4816_v13 = vld [vmem:[#allocation105_spill] sm:$0xff] }
 0x1ac   :  { %v1617_v39 = vadd.f32 %v1521_v54, %v1423_v0  ;;  %998 = vxpose.xlu1.b32.cont [4/16] %v4813_v5, 128  ;;  %v887_v6 = vpop.trf.xlu1  ;;  %966 = vxpose.xlu0.b32.cont [4/16] %v4814_v9, 128  ;;  %v855_v25 = vpop.trf.xlu0  ;;  %v1427_v58 = vmul.f32 %v3267_v33, %v3011_v26  ;;  %v1041_v5 = vmul.f32 %v3259_v62, %v3017_v30  ;;  %v4817_v9 = vld [vmem:[#allocation109_spill] sm:$0xff] }
 0x1ad   :  { %1357 = vst [vmem:[%s4462_s3 + $0x260] sm:$0xff] %v1261_v45  ;;  %1745 = vst [vmem:[%s4462_s3 + $0x270] sm:$0xff] %v1649_v42  ;;  %v1167_v20 = vmul.f32 %v3269_v2, %v887_v6  ;;  %v1555_v22 = vmul.f32 %v3271_v37, %v887_v6  ;;  %v1135_v44 = vmul.f32 %v3269_v2, %v855_v25 }
 0x1ae   :  { %1325 = vst [vmem:[%s4462_s3 + $0x60] sm:$0xff] %v1229_v17  ;;  %1713 = vst [vmem:[%s4462_s3 + $0x70] sm:$0xff] %v1617_v39  ;;  %v1523_v48 = vmul.f32 %v3271_v37, %v855_v25  ;;  %v1073_v42 = vmul.f32 %v3259_v62, %v3014_v28  ;;  %v1429_v6 = vmul.f32 %v3267_v33, %v3017_v30 }
 0x1af   :  { %v1263_v10 = vadd.f32 %v1167_v20, %v1069_v56  ;;  %v1651_v52 = vadd.f32 %v1555_v22, %v1457_v4  ;;  %v1231_v0 = vadd.f32 %v1135_v44, %v1037_v12  ;;  %v4818_v20 = vld [vmem:[#allocation108_spill] sm:$0xff] }
 0x1b0   :  { %v1619_v60 = vadd.f32 %v1523_v48, %v1425_v14  ;;  %999 = vxpose.xlu1.b32.cont [5/16] %v4815_v16, 128  ;;  %v888_v18 = vpop.trf.xlu1  ;;  %967 = vxpose.xlu0.b32.cont [5/16] %v4816_v13, 128  ;;  %v856_v54 = vpop.trf.xlu0  ;;  %v1461_v14 = vmul.f32 %v3267_v33, %v3014_v28  ;;  %v4819_v16 = vld [vmem:[#allocation112_spill] sm:$0xff]  ;;  %v4820_v13 = vld [vmem:[#allocation111_spill] sm:$0xff] }
 0x1b1   :  { %1359 = vst [vmem:[%s4462_s3 + $0x280] sm:$0xff] %v1263_v10  ;;  %1747 = vst [vmem:[%s4462_s3 + $0x290] sm:$0xff] %v1651_v52  ;;  %v1169_v24 = vmul.f32 %v3269_v2, %v888_v18  ;;  %v1557_v26 = vmul.f32 %v3271_v37, %v888_v18  ;;  %v1137_v56 = vmul.f32 %v3269_v2, %v856_v54 }
 0x1b2   :  { %1327 = vst [vmem:[%s4462_s3 + $0x80] sm:$0xff] %v1231_v0  ;;  %1715 = vst [vmem:[%s4462_s3 + $0x90] sm:$0xff] %v1619_v60  ;;  %v1525_v45 = vmul.f32 %v3271_v37, %v856_v54 }
 0x1b3   :  { %v1265_v17 = vadd.f32 %v1169_v24, %v1071_v8  ;;  %v1653_v39 = vadd.f32 %v1557_v26, %v1459_v21  ;;  %v1233_v4 = vadd.f32 %v1137_v56, %v1039_v29  ;;  %v1075_v8 = vmul.f32 %v3259_v62, %v3020_v32 }
 0x1b4   :  { %v1621_v12 = vadd.f32 %v1525_v45, %v1427_v58  ;;  %1000 = vxpose.xlu1.b32.cont [6/16] %v4817_v9, 128  ;;  %v889_v25 = vpop.trf.xlu1  ;;  %968 = vxpose.xlu0.b32.cont [6/16] %v4818_v20, 128  ;;  %v857_v22 = vpop.trf.xlu0  ;;  %v1463_v21 = vmul.f32 %v3267_v33, %v3020_v32  ;;  %v1043_v29 = vmul.f32 %v3259_v62, %v3023_v34  ;;  %v4822_v9 = vld [vmem:[#allocation114_spill] sm:$0xff] }
 0x1b5   :  { %1361 = vst [vmem:[%s4462_s3 + $0x2a0] sm:$0xff] %v1265_v17  ;;  %1749 = vst [vmem:[%s4462_s3 + $0x2b0] sm:$0xff] %v1653_v39  ;;  %v1171_v28 = vmul.f32 %v3269_v2, %v889_v25  ;;  %v1559_v30 = vmul.f32 %v3271_v37, %v889_v25  ;;  %v1139_v44 = vmul.f32 %v3269_v2, %v857_v22 }
 0x1b6   :  { %1329 = vst [vmem:[%s4462_s3 + $0xa0] sm:$0xff] %v1233_v4  ;;  %1717 = vst [vmem:[%s4462_s3 + $0xb0] sm:$0xff] %v1621_v12  ;;  %v1527_v48 = vmul.f32 %v3271_v37, %v857_v22  ;;  %v1431_v58 = vmul.f32 %v3267_v33, %v3023_v34  ;;  %v1077_v56 = vmul.f32 %v3259_v62, %v3026_v36 }
 0x1b7   :  { %v1267_v10 = vadd.f32 %v1171_v28, %v1073_v42  ;;  %v1655_v52 = vadd.f32 %v1559_v30, %v1461_v14  ;;  %v1235_v0 = vadd.f32 %v1139_v44, %v1041_v5  ;;  %v1465_v4 = vmul.f32 %v3267_v33, %v3026_v36  ;;  %v4821_v5 = vld [vmem:[#allocation115_spill] sm:$0xff] }
 0x1b8   :  { %v1623_v60 = vadd.f32 %v1527_v48, %v1429_v6  ;;  %1001 = vxpose.xlu1.b32.cont [7/16] %v4819_v16, 128  ;;  %v890_v18 = vpop.trf.xlu1  ;;  %969 = vxpose.xlu0.b32.cont [7/16] %v4820_v13, 128  ;;  %v858_v54 = vpop.trf.xlu0  ;;  %v1045_v12 = vmul.f32 %v3259_v62, %v3029_v38  ;;  %v1433_v14 = vmul.f32 %v3267_v33, %v3029_v38 }
 0x1b9   :  { %1363 = vst [vmem:[%s4462_s3 + $0x2c0] sm:$0xff] %v1267_v10  ;;  %1751 = vst [vmem:[%s4462_s3 + $0x2d0] sm:$0xff] %v1655_v52  ;;  %v1173_v32 = vmul.f32 %v3269_v2, %v890_v18  ;;  %v1561_v34 = vmul.f32 %v3271_v37, %v890_v18  ;;  %v1141_v24 = vmul.f32 %v3269_v2, %v858_v54 }
 0x1ba   :  { %1331 = vst [vmem:[%s4462_s3 + $0xc0] sm:$0xff] %v1235_v0  ;;  %1719 = vst [vmem:[%s4462_s3 + $0xd0] sm:$0xff] %v1623_v60  ;;  %v1529_v26 = vmul.f32 %v3271_v37, %v858_v54  ;;  %v1079_v28 = vmul.f32 %v3259_v62, %v3032_v40  ;;  %v1467_v10 = vmul.f32 %v3267_v33, %v3032_v40  ;;  %v4823_v60 = vld [vmem:[#allocation118_spill] sm:$0xff] }
 0x1bb   :  { %v1269_v45 = vadd.f32 %v1173_v32, %v1075_v8  ;;  %v1657_v42 = vadd.f32 %v1561_v34, %v1463_v21  ;;  %v1237_v17 = vadd.f32 %v1141_v24, %v1043_v29  ;;  %v1047_v52 = vmul.f32 %v3259_v62, %v3035_v43  ;;  %v4824_v29 = vld [vmem:[#allocation117_spill] sm:$0xff] }
 0x1bc   :  { %v1625_v39 = vadd.f32 %v1529_v26, %v1431_v58  ;;  %1002 = vxpose.xlu1.b32.cont [8/16] %v4821_v5, 128  ;;  %v891_v6 = vpop.trf.xlu1  ;;  %970 = vxpose.xlu0.b32.cont [8/16] %v4822_v9, 128  ;;  %v859_v25 = vpop.trf.xlu0  ;;  %v1435_v0 = vmul.f32 %v3267_v33, %v3035_v43  ;;  %v1081_v13 = vmul.f32 %v3259_v62, %v3038_v46 }
 0x1bd   :  { %1365 = vst [vmem:[%s4462_s3 + $0x2e0] sm:$0xff] %v1269_v45  ;;  %1753 = vst [vmem:[%s4462_s3 + $0x2f0] sm:$0xff] %v1657_v42  ;;  %v1175_v36 = vmul.f32 %v3269_v2, %v891_v6  ;;  %v1563_v38 = vmul.f32 %v3271_v37, %v891_v6  ;;  %v1143_v20 = vmul.f32 %v3269_v2, %v859_v25  ;;  %v4825_v42 = vld [vmem:[#allocation121_spill] sm:$0xff] }
 0x1be   :  { %1333 = vst [vmem:[%s4462_s3 + $0xe0] sm:$0xff] %v1237_v17  ;;  %1721 = vst [vmem:[%s4462_s3 + $0xf0] sm:$0xff] %v1625_v39  ;;  %v1531_v22 = vmul.f32 %v3271_v37, %v859_v25  ;;  %v1469_v26 = vmul.f32 %v3267_v33, %v3038_v46  ;;  %v1437_v45 = vmul.f32 %v3267_v33, %v3041_v51  ;;  %v4826_v39 = vld [vmem:[#allocation120_spill] sm:$0xff] }
 0x1bf   :  { %v1271_v30 = vadd.f32 %v1175_v36, %v1077_v56  ;;  %v1659_v44 = vadd.f32 %v1563_v38, %v1465_v4  ;;  %v1239_v48 = vadd.f32 %v1143_v20, %v1045_v12  ;;  %v1049_v56 = vmul.f32 %v3259_v62, %v3041_v51 }
 0x1c0   :  { %v1627_v8 = vadd.f32 %v1531_v22, %v1433_v14  ;;  %1003 = vxpose.xlu1.b32.cont [9/16] %v4823_v60, 128  ;;  %v892_v21 = vpop.trf.xlu1  ;;  %971 = vxpose.xlu0.b32.cont [9/16] %v4824_v29, 128  ;;  %v860_v58 = vpop.trf.xlu0  ;;  %v1083_v5 = vmul.f32 %v3259_v62, %v3044_v53  ;;  %v1471_v38 = vmul.f32 %v3267_v33, %v3044_v53 }
 0x1c1   :  { %1367 = vst [vmem:[%s4462_s3 + $0x300] sm:$0xff] %v1271_v30  ;;  %1755 = vst [vmem:[%s4462_s3 + $0x310] sm:$0xff] %v1659_v44  ;;  %v1177_v40 = vmul.f32 %v3269_v2, %v892_v21  ;;  %v1565_v43 = vmul.f32 %v3271_v37, %v892_v21  ;;  %v1145_v16 = vmul.f32 %v3269_v2, %v860_v58  ;;  %v4828_v44 = vld [vmem:[#allocation123_spill] sm:$0xff] }
 0x1c2   :  { %1335 = vst [vmem:[%s4462_s3 + $0x100] sm:$0xff] %v1239_v48  ;;  %1723 = vst [vmem:[%s4462_s3 + $0x110] sm:$0xff] %v1627_v8  ;;  %v1533_v18 = vmul.f32 %v3271_v37, %v860_v58  ;;  %v1051_v20 = vmul.f32 %v3259_v62, %v3047_v55  ;;  %v1439_v22 = vmul.f32 %v3267_v33, %v3047_v55 }
 0x1c3   :  { %v1273_v54 = vadd.f32 %v1177_v40, %v1079_v28  ;;  %v1661_v32 = vadd.f32 %v1565_v43, %v1467_v10  ;;  %v1241_v34 = vadd.f32 %v1145_v16, %v1047_v52  ;;  %v4827_v28 = vld [vmem:[#allocation124_spill] sm:$0xff]  ;;  %v1085_v52 = vmul.f32 %v3259_v62, %v3050_v57  ;;  %v4829_v16 = vld [vmem:[#allocation127_spill] sm:$0xff] }
 0x1c4   :  { %v1629_v24 = vadd.f32 %v1533_v18, %v1435_v0  ;;  %1004 = vxpose.xlu1.b32.cont [10/16] %v4825_v42, 128  ;;  %v893_v17 = vpop.trf.xlu1  ;;  %972 = vxpose.xlu0.b32.cont [10/16] %v4826_v39, 128  ;;  %v861_v4 = vpop.trf.xlu0  ;;  %v1473_v58 = vmul.f32 %v3267_v33, %v3050_v57  ;;  %v1053_v40 = vmul.f32 %v3259_v62, %v3053_v59 }
 0x1c5   :  { %1369 = vst [vmem:[%s4462_s3 + $0x320] sm:$0xff] %v1273_v54  ;;  %1757 = vst [vmem:[%s4462_s3 + $0x330] sm:$0xff] %v1661_v32  ;;  %v1179_v46 = vmul.f32 %v3269_v2, %v893_v17  ;;  %v1567_v51 = vmul.f32 %v3271_v37, %v893_v17  ;;  %v1147_v12 = vmul.f32 %v3269_v2, %v861_v4 }
 0x1c6   :  { %1337 = vst [vmem:[%s4462_s3 + $0x120] sm:$0xff] %v1241_v34  ;;  %1725 = vst [vmem:[%s4462_s3 + $0x130] sm:$0xff] %v1629_v24  ;;  %v1535_v14 = vmul.f32 %v3271_v37, %v861_v4  ;;  %v1441_v43 = vmul.f32 %v3267_v33, %v3053_v59  ;;  %v1087_v24 = vmul.f32 %v3259_v62, %v3056_v61 }
 0x1c7   :  { %v1275_v6 = vadd.f32 %v1179_v46, %v1081_v13  ;;  %v1663_v9 = vadd.f32 %v1567_v51, %v1469_v26  ;;  %v1243_v25 = vadd.f32 %v1147_v12, %v1049_v56  ;;  %v4830_v13 = vld [vmem:[#allocation126_spill] sm:$0xff]  ;;  %v1475_v17 = vmul.f32 %v3267_v33, %v3056_v61  ;;  %v4832_v12 = vld [vmem:[#allocation129_spill] sm:$0xff] }
 0x1c8   :  { %v1631_v36 = vadd.f32 %v1535_v14, %v1437_v45  ;;  %1005 = vxpose.xlu1.b32.cont [11/16] %v4827_v28, 128  ;;  %v894_v30 = vpop.trf.xlu1  ;;  %973 = vxpose.xlu0.b32.cont [11/16] %v4828_v44, 128  ;;  %v862_v48 = vpop.trf.xlu0  ;;  %v1055_v39 = vmul.f32 %v3259_v62, %v3059_v63  ;;  %v1443_v4 = vmul.f32 %v3267_v33, %v3059_v63  ;;  %v4831_v46 = vld [vmem:[#allocation130_spill] sm:$0xff]  ;;  %v4833_v44 = vld [vmem:[#allocation133_spill] sm:$0xff] }
 0x1c9   :  { %1371 = vst [vmem:[%s4462_s3 + $0x340] sm:$0xff] %v1275_v6  ;;  %1759 = vst [vmem:[%s4462_s3 + $0x350] sm:$0xff] %v1663_v9  ;;  %v1181_v53 = vmul.f32 %v3269_v2, %v894_v30  ;;  %v1569_v55 = vmul.f32 %v3271_v37, %v894_v30  ;;  %v1149_v8 = vmul.f32 %v3269_v2, %v862_v48 }
 0x1ca   :  { %1339 = vst [vmem:[%s4462_s3 + $0x140] sm:$0xff] %v1243_v25  ;;  %1727 = vst [vmem:[%s4462_s3 + $0x150] sm:$0xff] %v1631_v36  ;;  %v1537_v10 = vmul.f32 %v3271_v37, %v862_v48  ;;  %v1089_v9 = vmul.f32 %v3259_v62, %v3062_v1  ;;  %v1057_v28 = vmul.f32 %v3259_v62, %v3065_v3 }
 0x1cb   :  { %v1277_v0 = vadd.f32 %v1181_v53, %v1083_v5  ;;  %v1665_v60 = vadd.f32 %v1569_v55, %v1471_v38  ;;  %v1245_v21 = vadd.f32 %v1149_v8, %v1051_v20  ;;  %v1445_v30 = vmul.f32 %v3267_v33, %v3065_v3  ;;  %v4834_v53 = vld [vmem:[#allocation132_spill] sm:$0xff] }
 0x1cc   :  { %v1633_v29 = vadd.f32 %v1537_v10, %v1439_v22  ;;  %1006 = vxpose.xlu1.b32.cont [12/16] %v4829_v16, 128  ;;  %v895_v18 = vpop.trf.xlu1  ;;  %974 = vxpose.xlu0.b32.cont [12/16] %v4830_v13, 128  ;;  %v863_v54 = vpop.trf.xlu0  ;;  %v1477_v22 = vmul.f32 %v3267_v33, %v3062_v1  ;;  %v1030_v13 = vmul.f32 %v3259_v62, %v3074_v15 }
 0x1cd   :  { %1373 = vst [vmem:[%s4462_s3 + $0x360] sm:$0xff] %v1277_v0  ;;  %1761 = vst [vmem:[%s4462_s3 + $0x370] sm:$0xff] %v1665_v60  ;;  %v1183_v57 = vmul.f32 %v3269_v2, %v895_v18  ;;  %v1571_v59 = vmul.f32 %v3271_v37, %v895_v18  ;;  %v1151_v32 = vmul.f32 %v3269_v2, %v863_v54 }
 0x1ce   :  { %1341 = vst [vmem:[%s4462_s3 + $0x160] sm:$0xff] %v1245_v21  ;;  %1729 = vst [vmem:[%s4462_s3 + $0x170] sm:$0xff] %v1633_v29  ;;  %v1539_v34 = vmul.f32 %v3271_v37, %v863_v54 }
 0x1cf   :  { %v1279_v26 = vadd.f32 %v1183_v57, %v1085_v52  ;;  %v1667_v56 = vadd.f32 %v1571_v59, %v1473_v58  ;;  %v1247_v45 = vadd.f32 %v1151_v32, %v1053_v40  ;;  %v1091_v52 = vmul.f32 %v3259_v62, %v3068_v7 }
 0x1d0   :  { %v1635_v42 = vadd.f32 %v1539_v34, %v1441_v43  ;;  %1007 = vxpose.xlu1.b32.cont [13/16] %v4831_v46, 128  ;;  %v896_v51 = vpop.trf.xlu1  ;;  %975 = vxpose.xlu0.b32.cont [13/16] %v4832_v12, 128  ;;  %v864_v14 = vpop.trf.xlu0  ;;  %v1479_v58 = vmul.f32 %v3267_v33, %v3068_v7  ;;  %v1059_v40 = vmul.f32 %v3259_v62, %v3071_v11 }
 0x1d1   :  { %1375 = vst [vmem:[%s4462_s3 + $0x380] sm:$0xff] %v1279_v26  ;;  %1763 = vst [vmem:[%s4462_s3 + $0x390] sm:$0xff] %v1667_v56  ;;  %v1185_v61 = vmul.f32 %v3269_v2, %v896_v51  ;;  %v1573_v63 = vmul.f32 %v3271_v37, %v896_v51  ;;  %v1153_v5 = vmul.f32 %v3269_v2, %v864_v14 }
 0x1d2   :  { %1343 = vst [vmem:[%s4462_s3 + $0x180] sm:$0xff] %v1247_v45  ;;  %1731 = vst [vmem:[%s4462_s3 + $0x190] sm:$0xff] %v1635_v42  ;;  %v1541_v6 = vmul.f32 %v3271_v37, %v864_v14  ;;  %v1447_v43 = vmul.f32 %v3267_v33, %v3071_v11  ;;  %v1418_v34 = vmul.f32 %v3267_v33, %v3074_v15 }
 0x1d3   :  { %v1281_v25 = vadd.f32 %v1185_v61, %v1087_v24  ;;  %v1669_v36 = vadd.f32 %v1573_v63, %v1475_v17  ;;  %v1249_v38 = vadd.f32 %v1153_v5, %v1055_v39  ;;  %v1093_v24 = vmul.f32 %v3259_v62, %v3077_v19 }
 0x1d4   :  { %v1637_v20 = vadd.f32 %v1541_v6, %v1443_v4  ;;  %1008 = vxpose.xlu1.b32.cont [14/16] %v4833_v44, 128  ;;  %v897_v48 = vpop.trf.xlu1  ;;  %976 = vxpose.xlu0.b32.cont [14/16] %v4834_v53, 128  ;;  %v865_v55 = vpop.trf.xlu0  ;;  %v1481_v26 = vmul.f32 %v3267_v33, %v3077_v19  ;;  %v1032_v46 = vmul.f32 %v3259_v62, %v3080_v23 }
 0x1d5   :  { %1377 = vst [vmem:[%s4462_s3 + $0x3a0] sm:$0xff] %v1281_v25  ;;  %1765 = vst [vmem:[%s4462_s3 + $0x3b0] sm:$0xff] %v1669_v36  ;;  %v1187_v1 = vmul.f32 %v3269_v2, %v897_v48  ;;  %v1575_v3 = vmul.f32 %v3271_v37, %v897_v48  ;;  %v1155_v8 = vmul.f32 %v3269_v2, %v865_v55 }
 0x1d6   :  { %1345 = vst [vmem:[%s4462_s3 + $0x1a0] sm:$0xff] %v1249_v38  ;;  %1733 = vst [vmem:[%s4462_s3 + $0x1b0] sm:$0xff] %v1637_v20  ;;  %v1543_v10 = vmul.f32 %v3271_v37, %v865_v55  ;;  %v1420_v51 = vmul.f32 %v3267_v33, %v3080_v23  ;;  %v1095_v12 = vmul.f32 %v3259_v62, %v3083_v27 }
 0x1d7   :  { %v1283_v0 = vadd.f32 %v1187_v1, %v1089_v9  ;;  %v1671_v60 = vadd.f32 %v1575_v3, %v1477_v22  ;;  %v1251_v21 = vadd.f32 %v1155_v8, %v1057_v28  ;;  %v1483_v14 = vmul.f32 %v3267_v33, %v3083_v27 }
 0x1d8   :  { %v1639_v29 = vadd.f32 %v1543_v10, %v1445_v30  ;;  %1009 = vxpose.xlu1.b32.cont [15/16] %v2898_v50, 128  ;;  %v898_v16 = vpop.trf.xlu1  ;;  %977 = vxpose.xlu0.b32.cont [15/16] %v2893_v41, 128  ;;  %v866_v18 = vpop.trf.xlu0  ;;  %v1034_v20 = vmul.f32 %v3259_v62, %v3086_v31  ;;  %v1422_v22 = vmul.f32 %v3267_v33, %v3086_v31 }
 0x1d9   :  { %1379 = vst [vmem:[%s4462_s3 + $0x3c0] sm:$0xff] %v1283_v0  ;;  %1767 = vst [vmem:[%s4462_s3 + $0x3d0] sm:$0xff] %v1671_v60  ;;  %v1189_v50 = vmul.f32 %v3269_v2, %v898_v16  ;;  %v1577_v41 = vmul.f32 %v3271_v37, %v898_v16  ;;  %v1157_v7 = vmul.f32 %v3269_v2, %v866_v18 }
 0x1da   :  { %1347 = vst [vmem:[%s4462_s3 + $0x1c0] sm:$0xff] %v1251_v21  ;;  %1735 = vst [vmem:[%s4462_s3 + $0x1d0] sm:$0xff] %v1639_v29  ;;  %v1545_v11 = vmul.f32 %v3271_v37, %v866_v18  ;;  %v1097_v28 = vmul.f32 %v3259_v62, %v3089_v35  ;;  %v1485_v30 = vmul.f32 %v3267_v33, %v3089_v35  ;;  %v4836_v21 = vld [vmem:[#allocation38_spill] sm:$0xff] }
 0x1db   :  { %v1285_v54 = vadd.f32 %v1189_v50, %v1091_v52  ;;  %v1673_v57 = vadd.f32 %v1577_v41, %v1479_v58  ;;  %v1253_v59 = vadd.f32 %v1157_v7, %v1059_v40  ;;  %v4835_v52 = vld [vmem:[#allocation7_spill] sm:$0xff]  ;;  %v1099_v29 = vmul.f32 %v3259_v62, %v4836_v21 }
 0x1dc   :  { %v1641_v32 = vadd.f32 %v1545_v11, %v1447_v43  ;;  %1010 = vxpose.xlu1.b32.end [16/16] %v2913_v47, 128  ;;  %v947_v56 = vpop.trf.xlu1  ;;  %978 = vxpose.xlu0.b32.end [16/16] %v2908_v49, 128  ;;  %v915_v45 = vpop.trf.xlu0  ;;  %v1036_v0 = vmul.f32 %v3259_v62, %v4835_v52  ;;  %v1424_v60 = vmul.f32 %v3267_v33, %v4835_v52 }
 0x1dd   :  { %1381 = vst [vmem:[%s4462_s3 + $0x3e0] sm:$0xff] %v1285_v54  ;;  %1769 = vst [vmem:[%s4462_s3 + $0x3f0] sm:$0xff] %v1673_v57  ;;  %v1128_v47 = vmul.f32 %v3269_v2, %v947_v56  ;;  %v1516_v49 = vmul.f32 %v3271_v37, %v947_v56  ;;  %v1191_v15 = vmul.f32 %v3269_v2, %v915_v45  ;;  %v4837_v57 = vld [vmem:[#allocation8_spill] sm:$0xff] }
 0x1de   :  { %1349 = vst [vmem:[%s4462_s3 + $0x1e0] sm:$0xff] %v1253_v59  ;;  %1737 = vst [vmem:[%s4462_s3 + $0x1f0] sm:$0xff] %v1641_v32  ;;  %v1579_v19 = vmul.f32 %v3271_v37, %v915_v45  ;;  %v1487_v58 = vmul.f32 %v3267_v33, %v4836_v21  ;;  %v1038_v59 = vmul.f32 %v3259_v62, %v4837_v57 }
 0x1df   :  { %v1224_v42 = vadd.f32 %v1128_v47, %v1030_v13  ;;  %v1612_v17 = vadd.f32 %v1516_v49, %v1418_v34  ;;  %v1287_v39 = vadd.f32 %v1191_v15, %v1093_v24  ;;  %v1426_v32 = vmul.f32 %v3267_v33, %v4837_v57  ;;  %v4838_v34 = vld [vmem:[#allocation41_spill] sm:$0xff] }
 0x1e0   :  { %v1675_v4 = vadd.f32 %v1579_v19, %v1481_v26  ;;  %v948_v61 = vpop.trf.xlu1  ;;  %v916_v63 = vpop.trf.xlu0  ;;  %v1101_v24 = vmul.f32 %v3259_v62, %v4838_v34  ;;  %v1489_v26 = vmul.f32 %v3267_v33, %v4838_v34 }
 0x1e1   :  { %1320 = vst [vmem:[%s4462_s3 + $0x8] sm:$0xff] %v1224_v42  ;;  %1708 = vst [vmem:[%s4462_s3 + $0x18] sm:$0xff] %v1612_v17  ;;  %v1130_v23 = vmul.f32 %v3269_v2, %v948_v61  ;;  %v1518_v27 = vmul.f32 %v3271_v37, %v948_v61  ;;  %v1193_v5 = vmul.f32 %v3269_v2, %v916_v63 }
 0x1e2   :  { %1383 = vst [vmem:[%s4462_s3 + $0x400] sm:$0xff] %v1287_v39  ;;  %1771 = vst [vmem:[%s4462_s3 + $0x410] sm:$0xff] %v1675_v4  ;;  %v1581_v6 = vmul.f32 %v3271_v37, %v916_v63 }
 0x1e3   :  { %v1226_v9 = vadd.f32 %v1130_v23, %v1032_v46  ;;  %v1614_v25 = vadd.f32 %v1518_v27, %v1420_v51  ;;  %v1289_v36 = vadd.f32 %v1193_v5, %v1095_v12  ;;  %v4839_v46 = vld [vmem:[#allocation9_spill] sm:$0xff] }
 0x1e4   :  { %v1677_v38 = vadd.f32 %v1581_v6, %v1483_v14  ;;  %v949_v44 = vpop.trf.xlu1  ;;  %v917_v48 = vpop.trf.xlu0  ;;  %v1040_v51 = vmul.f32 %v3259_v62, %v4839_v46  ;;  %v1428_v12 = vmul.f32 %v3267_v33, %v4839_v46  ;;  %v4840_v14 = vld [vmem:[#allocation11_spill] sm:$0xff] }
 0x1e5   :  { %1322 = vst [vmem:[%s4462_s3 + $0x28] sm:$0xff] %v1226_v9  ;;  %1710 = vst [vmem:[%s4462_s3 + $0x38] sm:$0xff] %v1614_v25  ;;  %v1132_v31 = vmul.f32 %v3269_v2, %v949_v44  ;;  %v1520_v35 = vmul.f32 %v3271_v37, %v949_v44  ;;  %v1195_v53 = vmul.f32 %v3269_v2, %v917_v48 }
 0x1e6   :  { %1385 = vst [vmem:[%s4462_s3 + $0x420] sm:$0xff] %v1289_v36  ;;  %1773 = vst [vmem:[%s4462_s3 + $0x430] sm:$0xff] %v1677_v38  ;;  %v1583_v55 = vmul.f32 %v3271_v37, %v917_v48  ;;  %v1103_v61 = vmul.f32 %v3259_v62, %v4840_v14  ;;  %v1491_v63 = vmul.f32 %v3267_v33, %v4840_v14  ;;  %v4842_v48 = vld [vmem:[#allocation13_spill] sm:$0xff] }
 0x1e7   :  { %v1228_v1 = vadd.f32 %v1132_v31, %v1034_v20  ;;  %v1616_v3 = vadd.f32 %v1520_v35, %v1422_v22  ;;  %v1291_v8 = vadd.f32 %v1195_v53, %v1097_v28  ;;  %v4841_v28 = vld [vmem:[#allocation10_spill] sm:$0xff]  ;;  %v1105_v31 = vmul.f32 %v3259_v62, %v4842_v48 }
 0x1e8   :  { %v1679_v10 = vadd.f32 %v1583_v55, %v1485_v30  ;;  %v950_v40 = vpop.trf.xlu1  ;;  %v918_v43 = vpop.trf.xlu0  ;;  %v1042_v30 = vmul.f32 %v3259_v62, %v4841_v28  ;;  %v1430_v44 = vmul.f32 %v3267_v33, %v4841_v28  ;;  %v1493_v35 = vmul.f32 %v3267_v33, %v4842_v48 }
 0x1e9   :  { %1324 = vst [vmem:[%s4462_s3 + $0x48] sm:$0xff] %v1228_v1  ;;  %1712 = vst [vmem:[%s4462_s3 + $0x58] sm:$0xff] %v1616_v3  ;;  %v1134_v16 = vmul.f32 %v3269_v2, %v950_v40  ;;  %v1522_v18 = vmul.f32 %v3271_v37, %v950_v40  ;;  %v1197_v50 = vmul.f32 %v3269_v2, %v918_v43 }
 0x1ea   :  { %1387 = vst [vmem:[%s4462_s3 + $0x440] sm:$0xff] %v1291_v8  ;;  %1775 = vst [vmem:[%s4462_s3 + $0x450] sm:$0xff] %v1679_v10  ;;  %v1585_v41 = vmul.f32 %v3271_v37, %v918_v43  ;;  %v4844_v43 = vld [vmem:[#allocation15_spill] sm:$0xff] }
 0x1eb   :  { %v1230_v7 = vadd.f32 %v1134_v16, %v1036_v0  ;;  %v1618_v11 = vadd.f32 %v1522_v18, %v1424_v60  ;;  %v1293_v13 = vadd.f32 %v1197_v50, %v1099_v29  ;;  %v4843_v29 = vld [vmem:[#allocation12_spill] sm:$0xff]  ;;  %v1107_v16 = vmul.f32 %v3259_v62, %v4844_v43 }
 0x1ec   :  { %v1681_v54 = vadd.f32 %v1585_v41, %v1487_v58  ;;  %v951_v56 = vpop.trf.xlu1  ;;  %v919_v45 = vpop.trf.xlu0  ;;  %v1044_v58 = vmul.f32 %v3259_v62, %v4843_v29  ;;  %v1432_v40 = vmul.f32 %v3267_v33, %v4843_v29  ;;  %v1495_v18 = vmul.f32 %v3267_v33, %v4844_v43 }
 0x1ed   :  { %1326 = vst [vmem:[%s4462_s3 + $0x68] sm:$0xff] %v1230_v7  ;;  %1714 = vst [vmem:[%s4462_s3 + $0x78] sm:$0xff] %v1618_v11  ;;  %v1136_v47 = vmul.f32 %v3269_v2, %v951_v56  ;;  %v1524_v49 = vmul.f32 %v3271_v37, %v951_v56  ;;  %v1199_v15 = vmul.f32 %v3269_v2, %v919_v45 }
 0x1ee   :  { %1389 = vst [vmem:[%s4462_s3 + $0x460] sm:$0xff] %v1293_v13  ;;  %1777 = vst [vmem:[%s4462_s3 + $0x470] sm:$0xff] %v1681_v54  ;;  %v1587_v19 = vmul.f32 %v3271_v37, %v919_v45  ;;  %v4846_v45 = vld [vmem:[#allocation17_spill] sm:$0xff] }
 0x1ef   :  { %v1232_v42 = vadd.f32 %v1136_v47, %v1038_v59  ;;  %v1620_v17 = vadd.f32 %v1524_v49, %v1426_v32  ;;  %v1295_v39 = vadd.f32 %v1199_v15, %v1101_v24  ;;  %v4845_v24 = vld [vmem:[#allocation14_spill] sm:$0xff]  ;;  %v1109_v47 = vmul.f32 %v3259_v62, %v4846_v45 }
 0x1f0   :  { %v1683_v4 = vadd.f32 %v1587_v19, %v1489_v26  ;;  %v952_v23 = vpop.trf.xlu1  ;;  %v920_v27 = vpop.trf.xlu0  ;;  %v1046_v26 = vmul.f32 %v3259_v62, %v4845_v24  ;;  %v1434_v56 = vmul.f32 %v3267_v33, %v4845_v24  ;;  %v1497_v49 = vmul.f32 %v3267_v33, %v4846_v45 }
 0x1f1   :  { %1328 = vst [vmem:[%s4462_s3 + $0x88] sm:$0xff] %v1232_v42  ;;  %1716 = vst [vmem:[%s4462_s3 + $0x98] sm:$0xff] %v1620_v17  ;;  %v1138_v5 = vmul.f32 %v3269_v2, %v952_v23  ;;  %v1526_v6 = vmul.f32 %v3271_v37, %v952_v23  ;;  %v1201_v9 = vmul.f32 %v3269_v2, %v920_v27 }
 0x1f2   :  { %1391 = vst [vmem:[%s4462_s3 + $0x480] sm:$0xff] %v1295_v39  ;;  %1779 = vst [vmem:[%s4462_s3 + $0x490] sm:$0xff] %v1683_v4  ;;  %v1589_v25 = vmul.f32 %v3271_v37, %v920_v27  ;;  %v4848_v27 = vld [vmem:[#allocation19_spill] sm:$0xff] }
 0x1f3   :  { %v1234_v36 = vadd.f32 %v1138_v5, %v1040_v51  ;;  %v1622_v38 = vadd.f32 %v1526_v6, %v1428_v12  ;;  %v1297_v20 = vadd.f32 %v1201_v9, %v1103_v61  ;;  %v4847_v61 = vld [vmem:[#allocation16_spill] sm:$0xff]  ;;  %v1111_v5 = vmul.f32 %v3259_v62, %v4848_v27 }
 0x1f4   :  { %v1685_v22 = vadd.f32 %v1589_v25, %v1491_v63  ;;  %v953_v53 = vpop.trf.xlu1  ;;  %v921_v55 = vpop.trf.xlu0  ;;  %v1048_v63 = vmul.f32 %v3259_v62, %v4847_v61  ;;  %v1436_v23 = vmul.f32 %v3267_v33, %v4847_v61  ;;  %v1499_v6 = vmul.f32 %v3267_v33, %v4848_v27 }
 0x1f5   :  { %1330 = vst [vmem:[%s4462_s3 + $0xa8] sm:$0xff] %v1234_v36  ;;  %1718 = vst [vmem:[%s4462_s3 + $0xb8] sm:$0xff] %v1622_v38  ;;  %v1140_v1 = vmul.f32 %v3269_v2, %v953_v53  ;;  %v1528_v3 = vmul.f32 %v3271_v37, %v953_v53  ;;  %v1203_v8 = vmul.f32 %v3269_v2, %v921_v55 }
 0x1f6   :  { %1393 = vst [vmem:[%s4462_s3 + $0x4a0] sm:$0xff] %v1297_v20  ;;  %1781 = vst [vmem:[%s4462_s3 + $0x4b0] sm:$0xff] %v1685_v22  ;;  %v1591_v10 = vmul.f32 %v3271_v37, %v921_v55  ;;  %v4850_v55 = vld [vmem:[#allocation21_spill] sm:$0xff] }
 0x1f7   :  { %v1236_v52 = vadd.f32 %v1140_v1, %v1042_v30  ;;  %v1624_v0 = vadd.f32 %v1528_v3, %v1430_v44  ;;  %v1299_v60 = vadd.f32 %v1203_v8, %v1105_v31  ;;  %v4849_v31 = vld [vmem:[#allocation18_spill] sm:$0xff]  ;;  %v1113_v1 = vmul.f32 %v3259_v62, %v4850_v55 }
 0x1f8   :  { %v1687_v21 = vadd.f32 %v1591_v10, %v1493_v35  ;;  %v954_v50 = vpop.trf.xlu1  ;;  %v922_v41 = vpop.trf.xlu0  ;;  %v1050_v35 = vmul.f32 %v3259_v62, %v4849_v31  ;;  %v1438_v53 = vmul.f32 %v3267_v33, %v4849_v31  ;;  %v1501_v3 = vmul.f32 %v3267_v33, %v4850_v55 }
 0x1f9   :  { %1332 = vst [vmem:[%s4462_s3 + $0xc8] sm:$0xff] %v1236_v52  ;;  %1720 = vst [vmem:[%s4462_s3 + $0xd8] sm:$0xff] %v1624_v0  ;;  %v1142_v7 = vmul.f32 %v3269_v2, %v954_v50  ;;  %v1530_v11 = vmul.f32 %v3271_v37, %v954_v50  ;;  %v1205_v13 = vmul.f32 %v3269_v2, %v922_v41 }
 0x1fa   :  { %1395 = vst [vmem:[%s4462_s3 + $0x4c0] sm:$0xff] %v1299_v60  ;;  %1783 = vst [vmem:[%s4462_s3 + $0x4d0] sm:$0xff] %v1687_v21  ;;  %v1593_v54 = vmul.f32 %v3271_v37, %v922_v41  ;;  %v4852_v41 = vld [vmem:[#allocation23_spill] sm:$0xff] }
 0x1fb   :  { %v1238_v57 = vadd.f32 %v1142_v7, %v1044_v58  ;;  %v1626_v59 = vadd.f32 %v1530_v11, %v1432_v40  ;;  %v1301_v32 = vadd.f32 %v1205_v13, %v1107_v16  ;;  %v4851_v16 = vld [vmem:[#allocation20_spill] sm:$0xff]  ;;  %v1115_v7 = vmul.f32 %v3259_v62, %v4852_v41 }
 0x1fc   :  { %v1689_v34 = vadd.f32 %v1593_v54, %v1495_v18  ;;  %v955_v15 = vpop.trf.xlu1  ;;  %v923_v19 = vpop.trf.xlu0  ;;  %v1052_v18 = vmul.f32 %v3259_v62, %v4851_v16  ;;  %v1440_v50 = vmul.f32 %v3267_v33, %v4851_v16  ;;  %v1503_v11 = vmul.f32 %v3267_v33, %v4852_v41 }
 0x1fd   :  { %1334 = vst [vmem:[%s4462_s3 + $0xe8] sm:$0xff] %v1238_v57  ;;  %1722 = vst [vmem:[%s4462_s3 + $0xf8] sm:$0xff] %v1626_v59  ;;  %v1144_v42 = vmul.f32 %v3269_v2, %v955_v15  ;;  %v1532_v17 = vmul.f32 %v3271_v37, %v955_v15  ;;  %v1207_v39 = vmul.f32 %v3269_v2, %v923_v19 }
 0x1fe   :  { %1397 = vst [vmem:[%s4462_s3 + $0x4e0] sm:$0xff] %v1301_v32  ;;  %1785 = vst [vmem:[%s4462_s3 + $0x4f0] sm:$0xff] %v1689_v34  ;;  %v1595_v4 = vmul.f32 %v3271_v37, %v923_v19  ;;  %v4854_v19 = vld [vmem:[#allocation25_spill] sm:$0xff] }
 0x1ff   :  { %v1240_v46 = vadd.f32 %v1144_v42, %v1046_v26  ;;  %v1628_v51 = vadd.f32 %v1532_v17, %v1434_v56  ;;  %v1303_v12 = vadd.f32 %v1207_v39, %v1109_v47  ;;  %v4853_v47 = vld [vmem:[#allocation22_spill] sm:$0xff]  ;;  %v1117_v42 = vmul.f32 %v3259_v62, %v4854_v19 }
 0x200   :  { %v1691_v14 = vadd.f32 %v1595_v4, %v1497_v49  ;;  %v956_v9 = vpop.trf.xlu1  ;;  %v924_v25 = vpop.trf.xlu0  ;;  %v1054_v49 = vmul.f32 %v3259_v62, %v4853_v47  ;;  %v1442_v15 = vmul.f32 %v3267_v33, %v4853_v47  ;;  %v1505_v17 = vmul.f32 %v3267_v33, %v4854_v19 }
 0x201   :  { %1336 = vst [vmem:[%s4462_s3 + $0x108] sm:$0xff] %v1240_v46  ;;  %1724 = vst [vmem:[%s4462_s3 + $0x118] sm:$0xff] %v1628_v51  ;;  %v1146_v36 = vmul.f32 %v3269_v2, %v956_v9  ;;  %v1534_v38 = vmul.f32 %v3271_v37, %v956_v9  ;;  %v1209_v20 = vmul.f32 %v3269_v2, %v924_v25 }
 0x202   :  { %1399 = vst [vmem:[%s4462_s3 + $0x500] sm:$0xff] %v1303_v12  ;;  %1787 = vst [vmem:[%s4462_s3 + $0x510] sm:$0xff] %v1691_v14  ;;  %v1597_v22 = vmul.f32 %v3271_v37, %v924_v25  ;;  %v4856_v25 = vld [vmem:[#allocation27_spill] sm:$0xff] }
 0x203   :  { %v1242_v28 = vadd.f32 %v1146_v36, %v1048_v63  ;;  %v1630_v30 = vadd.f32 %v1534_v38, %v1436_v23  ;;  %v1305_v44 = vadd.f32 %v1209_v20, %v1111_v5  ;;  %v4855_v5 = vld [vmem:[#allocation24_spill] sm:$0xff]  ;;  %v1119_v36 = vmul.f32 %v3259_v62, %v4856_v25 }
 0x204   :  { %v1693_v48 = vadd.f32 %v1597_v22, %v1499_v6  ;;  %v957_v8 = vpop.trf.xlu1  ;;  %v925_v10 = vpop.trf.xlu0  ;;  %v1056_v6 = vmul.f32 %v3259_v62, %v4855_v5  ;;  %v1444_v9 = vmul.f32 %v3267_v33, %v4855_v5  ;;  %v1507_v38 = vmul.f32 %v3267_v33, %v4856_v25 }
 0x205   :  { %1338 = vst [vmem:[%s4462_s3 + $0x128] sm:$0xff] %v1242_v28  ;;  %1726 = vst [vmem:[%s4462_s3 + $0x138] sm:$0xff] %v1630_v30  ;;  %v1148_v52 = vmul.f32 %v3269_v2, %v957_v8  ;;  %v1536_v0 = vmul.f32 %v3271_v37, %v957_v8  ;;  %v1211_v60 = vmul.f32 %v3269_v2, %v925_v10 }
 0x206   :  { %1401 = vst [vmem:[%s4462_s3 + $0x520] sm:$0xff] %v1305_v44  ;;  %1789 = vst [vmem:[%s4462_s3 + $0x530] sm:$0xff] %v1693_v48  ;;  %v1599_v21 = vmul.f32 %v3271_v37, %v925_v10  ;;  %v4858_v10 = vld [vmem:[#allocation29_spill] sm:$0xff] }
 0x207   :  { %v1244_v29 = vadd.f32 %v1148_v52, %v1050_v35  ;;  %v1632_v58 = vadd.f32 %v1536_v0, %v1438_v53  ;;  %v1307_v40 = vadd.f32 %v1211_v60, %v1113_v1  ;;  %v4857_v1 = vld [vmem:[#allocation26_spill] sm:$0xff]  ;;  %v1121_v52 = vmul.f32 %v3259_v62, %v4858_v10 }
 0x208   :  { %v1695_v43 = vadd.f32 %v1599_v21, %v1501_v3  ;;  %v958_v13 = vpop.trf.xlu1  ;;  %v926_v54 = vpop.trf.xlu0  ;;  %v1058_v3 = vmul.f32 %v3259_v62, %v4857_v1  ;;  %v1446_v8 = vmul.f32 %v3267_v33, %v4857_v1  ;;  %v1509_v0 = vmul.f32 %v3267_v33, %v4858_v10 }
 0x209   :  { %1340 = vst [vmem:[%s4462_s3 + $0x148] sm:$0xff] %v1244_v29  ;;  %1728 = vst [vmem:[%s4462_s3 + $0x158] sm:$0xff] %v1632_v58  ;;  %v1150_v57 = vmul.f32 %v3269_v2, %v958_v13  ;;  %v1538_v59 = vmul.f32 %v3271_v37, %v958_v13  ;;  %v1213_v32 = vmul.f32 %v3269_v2, %v926_v54 }
 0x20a   :  { %1403 = vst [vmem:[%s4462_s3 + $0x540] sm:$0xff] %v1307_v40  ;;  %1791 = vst [vmem:[%s4462_s3 + $0x550] sm:$0xff] %v1695_v43  ;;  %v1601_v34 = vmul.f32 %v3271_v37, %v926_v54  ;;  %v4860_v54 = vld [vmem:[#allocation31_spill] sm:$0xff] }
 0x20b   :  { %v1246_v24 = vadd.f32 %v1150_v57, %v1052_v18  ;;  %v1634_v26 = vadd.f32 %v1538_v59, %v1440_v50  ;;  %v1309_v56 = vadd.f32 %v1213_v32, %v1115_v7  ;;  %v4859_v7 = vld [vmem:[#allocation28_spill] sm:$0xff]  ;;  %v1123_v57 = vmul.f32 %v3259_v62, %v4860_v54 }
 0x20c   :  { %v1697_v45 = vadd.f32 %v1601_v34, %v1503_v11  ;;  %v959_v39 = vpop.trf.xlu1  ;;  %v927_v4 = vpop.trf.xlu0  ;;  %v1060_v11 = vmul.f32 %v3259_v62, %v4859_v7  ;;  %v1448_v13 = vmul.f32 %v3267_v33, %v4859_v7  ;;  %v1511_v59 = vmul.f32 %v3267_v33, %v4860_v54 }
 0x20d   :  { %1342 = vst [vmem:[%s4462_s3 + $0x168] sm:$0xff] %v1246_v24  ;;  %1730 = vst [vmem:[%s4462_s3 + $0x178] sm:$0xff] %v1634_v26  ;;  %v1152_v46 = vmul.f32 %v3269_v2, %v959_v39  ;;  %v1540_v51 = vmul.f32 %v3271_v37, %v959_v39  ;;  %v1215_v12 = vmul.f32 %v3269_v2, %v927_v4 }
 0x20e   :  { %1405 = vst [vmem:[%s4462_s3 + $0x560] sm:$0xff] %v1309_v56  ;;  %1793 = vst [vmem:[%s4462_s3 + $0x570] sm:$0xff] %v1697_v45  ;;  %v1603_v14 = vmul.f32 %v3271_v37, %v927_v4  ;;  %v4862_v4 = vld [vmem:[#allocation33_spill] sm:$0xff] }
 0x20f   :  { %v1248_v61 = vadd.f32 %v1152_v46, %v1054_v49  ;;  %v1636_v63 = vadd.f32 %v1540_v51, %v1442_v15  ;;  %v1311_v23 = vadd.f32 %v1215_v12, %v1117_v42  ;;  %v4861_v42 = vld [vmem:[#allocation30_spill] sm:$0xff]  ;;  %v1062_v46 = vmul.f32 %v3259_v62, %v4862_v4 }
 0x210   :  { %v1699_v27 = vadd.f32 %v1603_v14, %v1505_v17  ;;  %v960_v20 = vpop.trf.xlu1  ;;  %v928_v22 = vpop.trf.xlu0  ;;  %v1094_v17 = vmul.f32 %v3259_v62, %v4861_v42  ;;  %v1482_v39 = vmul.f32 %v3267_v33, %v4861_v42  ;;  %v1450_v51 = vmul.f32 %v3267_v33, %v4862_v4 }
 0x211   :  { %1344 = vst [vmem:[%s4462_s3 + $0x188] sm:$0xff] %v1248_v61  ;;  %1732 = vst [vmem:[%s4462_s3 + $0x198] sm:$0xff] %v1636_v63  ;;  %v1154_v28 = vmul.f32 %v3269_v2, %v960_v20  ;;  %v1542_v30 = vmul.f32 %v3271_v37, %v960_v20  ;;  %v1217_v44 = vmul.f32 %v3269_v2, %v928_v22 }
 0x212   :  { %1407 = vst [vmem:[%s4462_s3 + $0x580] sm:$0xff] %v1311_v23  ;;  %1795 = vst [vmem:[%s4462_s3 + $0x590] sm:$0xff] %v1699_v27  ;;  %v1605_v48 = vmul.f32 %v3271_v37, %v928_v22  ;;  %v4864_v22 = vld [vmem:[#allocation35_spill] sm:$0xff] }
 0x213   :  { %v1250_v31 = vadd.f32 %v1154_v28, %v1056_v6  ;;  %v1638_v35 = vadd.f32 %v1542_v30, %v1444_v9  ;;  %v1313_v53 = vadd.f32 %v1217_v44, %v1119_v36  ;;  %v4863_v36 = vld [vmem:[#allocation32_spill] sm:$0xff]  ;;  %v1064_v28 = vmul.f32 %v3259_v62, %v4864_v22 }
 0x214   :  { %v1701_v55 = vadd.f32 %v1605_v48, %v1507_v38  ;;  %v961_v60 = vpop.trf.xlu1  ;;  %v929_v21 = vpop.trf.xlu0  ;;  %v1096_v38 = vmul.f32 %v3259_v62, %v4863_v36  ;;  %v1484_v20 = vmul.f32 %v3267_v33, %v4863_v36  ;;  %v1452_v30 = vmul.f32 %v3267_v33, %v4864_v22 }
 0x215   :  { %1346 = vst [vmem:[%s4462_s3 + $0x1a8] sm:$0xff] %v1250_v31  ;;  %1734 = vst [vmem:[%s4462_s3 + $0x1b8] sm:$0xff] %v1638_v35  ;;  %v1156_v29 = vmul.f32 %v3269_v2, %v961_v60  ;;  %v1544_v58 = vmul.f32 %v3271_v37, %v961_v60  ;;  %v1219_v40 = vmul.f32 %v3269_v2, %v929_v21 }
 0x216   :  { %1409 = vst [vmem:[%s4462_s3 + $0x5a0] sm:$0xff] %v1313_v53  ;;  %1797 = vst [vmem:[%s4462_s3 + $0x5b0] sm:$0xff] %v1701_v55  ;;  %v1607_v43 = vmul.f32 %v3271_v37, %v929_v21  ;;  %v4866_v21 = vld [vmem:[#allocation37_spill] sm:$0xff] }
 0x217   :  { %v1252_v16 = vadd.f32 %v1156_v29, %v1058_v3  ;;  %v1640_v18 = vadd.f32 %v1544_v58, %v1446_v8  ;;  %v1315_v50 = vadd.f32 %v1219_v40, %v1121_v52  ;;  %v4865_v52 = vld [vmem:[#allocation34_spill] sm:$0xff]  ;;  %v1066_v29 = vmul.f32 %v3259_v62, %v4866_v21 }
 0x218   :  { %v1703_v41 = vadd.f32 %v1607_v43, %v1509_v0  ;;  %v962_v32 = vpop.trf.xlu1  ;;  %v930_v34 = vpop.trf.xlu0  ;;  %v1098_v0 = vmul.f32 %v3259_v62, %v4865_v52  ;;  %v1486_v60 = vmul.f32 %v3267_v33, %v4865_v52  ;;  %v1454_v58 = vmul.f32 %v3267_v33, %v4866_v21 }
 0x219   :  { %1348 = vst [vmem:[%s4462_s3 + $0x1c8] sm:$0xff] %v1252_v16  ;;  %1736 = vst [vmem:[%s4462_s3 + $0x1d8] sm:$0xff] %v1640_v18  ;;  %v1158_v24 = vmul.f32 %v3269_v2, %v962_v32  ;;  %v1546_v26 = vmul.f32 %v3271_v37, %v962_v32  ;;  %v1221_v56 = vmul.f32 %v3269_v2, %v930_v34 }
 0x21a   :  { %1411 = vst [vmem:[%s4462_s3 + $0x5c0] sm:$0xff] %v1315_v50  ;;  %1799 = vst [vmem:[%s4462_s3 + $0x5d0] sm:$0xff] %v1703_v41  ;;  %v1609_v45 = vmul.f32 %v3271_v37, %v930_v34  ;;  %v4868_v34 = vld [vmem:[#allocation40_spill] sm:$0xff] }
 0x21b   :  { %v1254_v47 = vadd.f32 %v1158_v24, %v1060_v11  ;;  %v1642_v49 = vadd.f32 %v1546_v26, %v1448_v13  ;;  %v1317_v15 = vadd.f32 %v1221_v56, %v1123_v57  ;;  %v4867_v57 = vld [vmem:[#allocation36_spill] sm:$0xff]  ;;  %v1068_v24 = vmul.f32 %v3259_v62, %v4868_v34 }
 0x21c   :  { %v1705_v19 = vadd.f32 %v1609_v45, %v1511_v59  ;;  %v1011_v12 = vpop.trf.xlu1  ;;  %v979_v14 = vpop.trf.xlu0  ;;  %v1100_v59 = vmul.f32 %v3259_v62, %v4867_v57  ;;  %v1488_v32 = vmul.f32 %v3267_v33, %v4867_v57  ;;  %v1456_v26 = vmul.f32 %v3267_v33, %v4868_v34 }
 0x21d   :  { %1350 = vst [vmem:[%s4462_s3 + $0x1e8] sm:$0xff] %v1254_v47  ;;  %1738 = vst [vmem:[%s4462_s3 + $0x1f8] sm:$0xff] %v1642_v49  ;;  %v1192_v61 = vmul.f32 %v3269_v2, %v1011_v12  ;;  %v1580_v63 = vmul.f32 %v3271_v37, %v1011_v12  ;;  %v1160_v23 = vmul.f32 %v3269_v2, %v979_v14 }
 0x21e   :  { %1413 = vst [vmem:[%s4462_s3 + $0x5e0] sm:$0xff] %v1317_v15  ;;  %1801 = vst [vmem:[%s4462_s3 + $0x5f0] sm:$0xff] %v1705_v19  ;;  %v1548_v27 = vmul.f32 %v3271_v37, %v979_v14  ;;  %v4870_v14 = vld [vmem:[#allocation43_spill] sm:$0xff] }
 0x21f   :  { %v1288_v5 = vadd.f32 %v1192_v61, %v1094_v17  ;;  %v1676_v6 = vadd.f32 %v1580_v63, %v1482_v39  ;;  %v1256_v9 = vadd.f32 %v1160_v23, %v1062_v46  ;;  %v4869_v46 = vld [vmem:[#allocation39_spill] sm:$0xff]  ;;  %v1070_v61 = vmul.f32 %v3259_v62, %v4870_v14 }
 0x220   :  { %v1644_v25 = vadd.f32 %v1548_v27, %v1450_v51  ;;  %v1012_v44 = vpop.trf.xlu1  ;;  %v980_v48 = vpop.trf.xlu0  ;;  %v1102_v51 = vmul.f32 %v3259_v62, %v4869_v46  ;;  %v1490_v12 = vmul.f32 %v3267_v33, %v4869_v46  ;;  %v1458_v63 = vmul.f32 %v3267_v33, %v4870_v14 }
 0x221   :  { %1384 = vst [vmem:[%s4462_s3 + $0x408] sm:$0xff] %v1288_v5  ;;  %1772 = vst [vmem:[%s4462_s3 + $0x418] sm:$0xff] %v1676_v6  ;;  %v1194_v31 = vmul.f32 %v3269_v2, %v1012_v44  ;;  %v1582_v35 = vmul.f32 %v3271_v37, %v1012_v44  ;;  %v1162_v53 = vmul.f32 %v3269_v2, %v980_v48 }
 0x222   :  { %1352 = vst [vmem:[%s4462_s3 + $0x208] sm:$0xff] %v1256_v9  ;;  %1740 = vst [vmem:[%s4462_s3 + $0x218] sm:$0xff] %v1644_v25  ;;  %v1550_v55 = vmul.f32 %v3271_v37, %v980_v48  ;;  %v4872_v48 = vld [vmem:[#allocation45_spill] sm:$0xff] }
 0x223   :  { %v1290_v1 = vadd.f32 %v1194_v31, %v1096_v38  ;;  %v1678_v3 = vadd.f32 %v1582_v35, %v1484_v20  ;;  %v1258_v8 = vadd.f32 %v1162_v53, %v1064_v28  ;;  %v4871_v28 = vld [vmem:[#allocation42_spill] sm:$0xff]  ;;  %v1072_v31 = vmul.f32 %v3259_v62, %v4872_v48 }
 0x224   :  { %v1646_v10 = vadd.f32 %v1550_v55, %v1452_v30  ;;  %v1013_v40 = vpop.trf.xlu1  ;;  %v981_v43 = vpop.trf.xlu0  ;;  %v1104_v30 = vmul.f32 %v3259_v62, %v4871_v28  ;;  %v1492_v44 = vmul.f32 %v3267_v33, %v4871_v28  ;;  %v1460_v35 = vmul.f32 %v3267_v33, %v4872_v48 }
 0x225   :  { %1386 = vst [vmem:[%s4462_s3 + $0x428] sm:$0xff] %v1290_v1  ;;  %1774 = vst [vmem:[%s4462_s3 + $0x438] sm:$0xff] %v1678_v3  ;;  %v1196_v16 = vmul.f32 %v3269_v2, %v1013_v40  ;;  %v1584_v18 = vmul.f32 %v3271_v37, %v1013_v40  ;;  %v1164_v50 = vmul.f32 %v3269_v2, %v981_v43 }
 0x226   :  { %1354 = vst [vmem:[%s4462_s3 + $0x228] sm:$0xff] %v1258_v8  ;;  %1742 = vst [vmem:[%s4462_s3 + $0x238] sm:$0xff] %v1646_v10  ;;  %v1552_v41 = vmul.f32 %v3271_v37, %v981_v43  ;;  %v4874_v43 = vld [vmem:[#allocation48_spill] sm:$0xff] }
 0x227   :  { %v1292_v7 = vadd.f32 %v1196_v16, %v1098_v0  ;;  %v1680_v11 = vadd.f32 %v1584_v18, %v1486_v60  ;;  %v1260_v13 = vadd.f32 %v1164_v50, %v1066_v29  ;;  %v4873_v29 = vld [vmem:[#allocation44_spill] sm:$0xff]  ;;  %v1074_v16 = vmul.f32 %v3259_v62, %v4874_v43 }
 0x228   :  { %v1648_v54 = vadd.f32 %v1552_v41, %v1454_v58  ;;  %v1014_v56 = vpop.trf.xlu1  ;;  %v982_v45 = vpop.trf.xlu0  ;;  %v1106_v58 = vmul.f32 %v3259_v62, %v4873_v29  ;;  %v1494_v40 = vmul.f32 %v3267_v33, %v4873_v29  ;;  %v1462_v18 = vmul.f32 %v3267_v33, %v4874_v43 }
 0x229   :  { %1388 = vst [vmem:[%s4462_s3 + $0x448] sm:$0xff] %v1292_v7  ;;  %1776 = vst [vmem:[%s4462_s3 + $0x458] sm:$0xff] %v1680_v11  ;;  %v1198_v47 = vmul.f32 %v3269_v2, %v1014_v56  ;;  %v1586_v49 = vmul.f32 %v3271_v37, %v1014_v56  ;;  %v1166_v15 = vmul.f32 %v3269_v2, %v982_v45 }
 0x22a   :  { %1356 = vst [vmem:[%s4462_s3 + $0x248] sm:$0xff] %v1260_v13  ;;  %1744 = vst [vmem:[%s4462_s3 + $0x258] sm:$0xff] %v1648_v54  ;;  %v1554_v19 = vmul.f32 %v3271_v37, %v982_v45  ;;  %v4876_v45 = vld [vmem:[#allocation51_spill] sm:$0xff] }
 0x22b   :  { %v1294_v42 = vadd.f32 %v1198_v47, %v1100_v59  ;;  %v1682_v17 = vadd.f32 %v1586_v49, %v1488_v32  ;;  %v1262_v39 = vadd.f32 %v1166_v15, %v1068_v24  ;;  %v4875_v24 = vld [vmem:[#allocation47_spill] sm:$0xff]  ;;  %v1076_v47 = vmul.f32 %v3259_v62, %v4876_v45 }
 0x22c   :  { %v1650_v4 = vadd.f32 %v1554_v19, %v1456_v26  ;;  %v1015_v23 = vpop.trf.xlu1  ;;  %v983_v27 = vpop.trf.xlu0  ;;  %v1108_v26 = vmul.f32 %v3259_v62, %v4875_v24  ;;  %v1496_v56 = vmul.f32 %v3267_v33, %v4875_v24  ;;  %v1464_v49 = vmul.f32 %v3267_v33, %v4876_v45 }
 0x22d   :  { %1390 = vst [vmem:[%s4462_s3 + $0x468] sm:$0xff] %v1294_v42  ;;  %1778 = vst [vmem:[%s4462_s3 + $0x478] sm:$0xff] %v1682_v17  ;;  %v1200_v5 = vmul.f32 %v3269_v2, %v1015_v23  ;;  %v1588_v6 = vmul.f32 %v3271_v37, %v1015_v23  ;;  %v1168_v9 = vmul.f32 %v3269_v2, %v983_v27 }
 0x22e   :  { %1358 = vst [vmem:[%s4462_s3 + $0x268] sm:$0xff] %v1262_v39  ;;  %1746 = vst [vmem:[%s4462_s3 + $0x278] sm:$0xff] %v1650_v4  ;;  %v1556_v25 = vmul.f32 %v3271_v37, %v983_v27  ;;  %v4878_v27 = vld [vmem:[#allocation54_spill] sm:$0xff] }
 0x22f   :  { %v1296_v36 = vadd.f32 %v1200_v5, %v1102_v51  ;;  %v1684_v38 = vadd.f32 %v1588_v6, %v1490_v12  ;;  %v1264_v20 = vadd.f32 %v1168_v9, %v1070_v61  ;;  %v4877_v61 = vld [vmem:[#allocation50_spill] sm:$0xff]  ;;  %v1078_v5 = vmul.f32 %v3259_v62, %v4878_v27 }
 0x230   :  { %v1652_v22 = vadd.f32 %v1556_v25, %v1458_v63  ;;  %v1016_v53 = vpop.trf.xlu1  ;;  %v984_v55 = vpop.trf.xlu0  ;;  %v1110_v63 = vmul.f32 %v3259_v62, %v4877_v61  ;;  %v1498_v23 = vmul.f32 %v3267_v33, %v4877_v61  ;;  %v1466_v6 = vmul.f32 %v3267_v33, %v4878_v27 }
 0x231   :  { %1392 = vst [vmem:[%s4462_s3 + $0x488] sm:$0xff] %v1296_v36  ;;  %1780 = vst [vmem:[%s4462_s3 + $0x498] sm:$0xff] %v1684_v38  ;;  %v1202_v1 = vmul.f32 %v3269_v2, %v1016_v53  ;;  %v1590_v3 = vmul.f32 %v3271_v37, %v1016_v53  ;;  %v1170_v8 = vmul.f32 %v3269_v2, %v984_v55 }
 0x232   :  { %1360 = vst [vmem:[%s4462_s3 + $0x288] sm:$0xff] %v1264_v20  ;;  %1748 = vst [vmem:[%s4462_s3 + $0x298] sm:$0xff] %v1652_v22  ;;  %v1558_v10 = vmul.f32 %v3271_v37, %v984_v55  ;;  %v4880_v55 = vld [vmem:[#allocation57_spill] sm:$0xff] }
 0x233   :  { %v1298_v52 = vadd.f32 %v1202_v1, %v1104_v30  ;;  %v1686_v0 = vadd.f32 %v1590_v3, %v1492_v44  ;;  %v1266_v60 = vadd.f32 %v1170_v8, %v1072_v31  ;;  %v4879_v31 = vld [vmem:[#allocation53_spill] sm:$0xff]  ;;  %v1080_v1 = vmul.f32 %v3259_v62, %v4880_v55 }
 0x234   :  { %v1654_v21 = vadd.f32 %v1558_v10, %v1460_v35  ;;  %v1017_v50 = vpop.trf.xlu1  ;;  %v985_v41 = vpop.trf.xlu0  ;;  %v1112_v35 = vmul.f32 %v3259_v62, %v4879_v31  ;;  %v1500_v53 = vmul.f32 %v3267_v33, %v4879_v31  ;;  %v1468_v3 = vmul.f32 %v3267_v33, %v4880_v55 }
 0x235   :  { %1394 = vst [vmem:[%s4462_s3 + $0x4a8] sm:$0xff] %v1298_v52  ;;  %1782 = vst [vmem:[%s4462_s3 + $0x4b8] sm:$0xff] %v1686_v0  ;;  %v1204_v7 = vmul.f32 %v3269_v2, %v1017_v50  ;;  %v1592_v11 = vmul.f32 %v3271_v37, %v1017_v50  ;;  %v1172_v13 = vmul.f32 %v3269_v2, %v985_v41 }
 0x236   :  { %1362 = vst [vmem:[%s4462_s3 + $0x2a8] sm:$0xff] %v1266_v60  ;;  %1750 = vst [vmem:[%s4462_s3 + $0x2b8] sm:$0xff] %v1654_v21  ;;  %v1560_v54 = vmul.f32 %v3271_v37, %v985_v41  ;;  %v4882_v41 = vld [vmem:[#allocation60_spill] sm:$0xff] }
 0x237   :  { %v1300_v57 = vadd.f32 %v1204_v7, %v1106_v58  ;;  %v1688_v59 = vadd.f32 %v1592_v11, %v1494_v40  ;;  %v1268_v32 = vadd.f32 %v1172_v13, %v1074_v16  ;;  %v4881_v16 = vld [vmem:[#allocation56_spill] sm:$0xff]  ;;  %v1082_v7 = vmul.f32 %v3259_v62, %v4882_v41 }
 0x238   :  { %v1656_v34 = vadd.f32 %v1560_v54, %v1462_v18  ;;  %v1018_v15 = vpop.trf.xlu1  ;;  %v986_v19 = vpop.trf.xlu0  ;;  %v1114_v18 = vmul.f32 %v3259_v62, %v4881_v16  ;;  %v1502_v50 = vmul.f32 %v3267_v33, %v4881_v16  ;;  %v1470_v11 = vmul.f32 %v3267_v33, %v4882_v41 }
 0x239   :  { %1396 = vst [vmem:[%s4462_s3 + $0x4c8] sm:$0xff] %v1300_v57  ;;  %1784 = vst [vmem:[%s4462_s3 + $0x4d8] sm:$0xff] %v1688_v59  ;;  %v1206_v42 = vmul.f32 %v3269_v2, %v1018_v15  ;;  %v1594_v17 = vmul.f32 %v3271_v37, %v1018_v15  ;;  %v1174_v39 = vmul.f32 %v3269_v2, %v986_v19 }
 0x23a   :  { %1364 = vst [vmem:[%s4462_s3 + $0x2c8] sm:$0xff] %v1268_v32  ;;  %1752 = vst [vmem:[%s4462_s3 + $0x2d8] sm:$0xff] %v1656_v34  ;;  %v1562_v4 = vmul.f32 %v3271_v37, %v986_v19  ;;  %v4884_v19 = vld [vmem:[#allocation63_spill] sm:$0xff] }
 0x23b   :  { %v1302_v46 = vadd.f32 %v1206_v42, %v1108_v26  ;;  %v1690_v51 = vadd.f32 %v1594_v17, %v1496_v56  ;;  %v1270_v12 = vadd.f32 %v1174_v39, %v1076_v47  ;;  %v4883_v47 = vld [vmem:[#allocation59_spill] sm:$0xff]  ;;  %v1084_v42 = vmul.f32 %v3259_v62, %v4884_v19 }
 0x23c   :  { %v1658_v14 = vadd.f32 %v1562_v4, %v1464_v49  ;;  %v1019_v9 = vpop.trf.xlu1  ;;  %v987_v25 = vpop.trf.xlu0  ;;  %v1116_v49 = vmul.f32 %v3259_v62, %v4883_v47  ;;  %v1504_v15 = vmul.f32 %v3267_v33, %v4883_v47  ;;  %v1472_v17 = vmul.f32 %v3267_v33, %v4884_v19 }
 0x23d   :  { %1398 = vst [vmem:[%s4462_s3 + $0x4e8] sm:$0xff] %v1302_v46  ;;  %1786 = vst [vmem:[%s4462_s3 + $0x4f8] sm:$0xff] %v1690_v51  ;;  %v1208_v36 = vmul.f32 %v3269_v2, %v1019_v9  ;;  %v1596_v38 = vmul.f32 %v3271_v37, %v1019_v9  ;;  %v1176_v20 = vmul.f32 %v3269_v2, %v987_v25 }
 0x23e   :  { %1366 = vst [vmem:[%s4462_s3 + $0x2e8] sm:$0xff] %v1270_v12  ;;  %1754 = vst [vmem:[%s4462_s3 + $0x2f8] sm:$0xff] %v1658_v14  ;;  %v1564_v22 = vmul.f32 %v3271_v37, %v987_v25  ;;  %v4886_v25 = vld [vmem:[#allocation66_spill] sm:$0xff] }
 0x23f   :  { %v1304_v28 = vadd.f32 %v1208_v36, %v1110_v63  ;;  %v1692_v30 = vadd.f32 %v1596_v38, %v1498_v23  ;;  %v1272_v44 = vadd.f32 %v1176_v20, %v1078_v5  ;;  %v4885_v5 = vld [vmem:[#allocation62_spill] sm:$0xff]  ;;  %v1086_v36 = vmul.f32 %v3259_v62, %v4886_v25 }
 0x240   :  { %v1660_v48 = vadd.f32 %v1564_v22, %v1466_v6  ;;  %v1020_v8 = vpop.trf.xlu1  ;;  %v988_v10 = vpop.trf.xlu0  ;;  %v1118_v6 = vmul.f32 %v3259_v62, %v4885_v5  ;;  %v1506_v9 = vmul.f32 %v3267_v33, %v4885_v5  ;;  %v1474_v38 = vmul.f32 %v3267_v33, %v4886_v25 }
 0x241   :  { %1400 = vst [vmem:[%s4462_s3 + $0x508] sm:$0xff] %v1304_v28  ;;  %1788 = vst [vmem:[%s4462_s3 + $0x518] sm:$0xff] %v1692_v30  ;;  %v1210_v52 = vmul.f32 %v3269_v2, %v1020_v8  ;;  %v1598_v0 = vmul.f32 %v3271_v37, %v1020_v8  ;;  %v1178_v60 = vmul.f32 %v3269_v2, %v988_v10 }
 0x242   :  { %1368 = vst [vmem:[%s4462_s3 + $0x308] sm:$0xff] %v1272_v44  ;;  %1756 = vst [vmem:[%s4462_s3 + $0x318] sm:$0xff] %v1660_v48  ;;  %v1566_v21 = vmul.f32 %v3271_v37, %v988_v10  ;;  %v4888_v10 = vld [vmem:[#allocation69_spill] sm:$0xff] }
 0x243   :  { %v1306_v29 = vadd.f32 %v1210_v52, %v1112_v35  ;;  %v1694_v58 = vadd.f32 %v1598_v0, %v1500_v53  ;;  %v1274_v40 = vadd.f32 %v1178_v60, %v1080_v1  ;;  %v4887_v1 = vld [vmem:[#allocation65_spill] sm:$0xff]  ;;  %v1088_v52 = vmul.f32 %v3259_v62, %v4888_v10 }
 0x244   :  { %v1662_v43 = vadd.f32 %v1566_v21, %v1468_v3  ;;  %v1021_v13 = vpop.trf.xlu1  ;;  %v989_v54 = vpop.trf.xlu0  ;;  %v1120_v3 = vmul.f32 %v3259_v62, %v4887_v1  ;;  %v1508_v8 = vmul.f32 %v3267_v33, %v4887_v1  ;;  %v1476_v0 = vmul.f32 %v3267_v33, %v4888_v10 }
 0x245   :  { %1402 = vst [vmem:[%s4462_s3 + $0x528] sm:$0xff] %v1306_v29  ;;  %1790 = vst [vmem:[%s4462_s3 + $0x538] sm:$0xff] %v1694_v58  ;;  %v1212_v57 = vmul.f32 %v3269_v2, %v1021_v13  ;;  %v1600_v59 = vmul.f32 %v3271_v37, %v1021_v13  ;;  %v1180_v32 = vmul.f32 %v3269_v2, %v989_v54 }
 0x246   :  { %1370 = vst [vmem:[%s4462_s3 + $0x328] sm:$0xff] %v1274_v40  ;;  %1758 = vst [vmem:[%s4462_s3 + $0x338] sm:$0xff] %v1662_v43  ;;  %v1568_v34 = vmul.f32 %v3271_v37, %v989_v54  ;;  %v4890_v54 = vld [vmem:[#allocation72_spill] sm:$0xff] }
 0x247   :  { %v1308_v24 = vadd.f32 %v1212_v57, %v1114_v18  ;;  %v1696_v26 = vadd.f32 %v1600_v59, %v1502_v50  ;;  %v1276_v56 = vadd.f32 %v1180_v32, %v1082_v7  ;;  %v4889_v7 = vld [vmem:[#allocation68_spill] sm:$0xff]  ;;  %v1090_v57 = vmul.f32 %v3259_v62, %v4890_v54 }
 0x248   :  { %v1664_v45 = vadd.f32 %v1568_v34, %v1470_v11  ;;  %v1022_v39 = vpop.trf.xlu1  ;;  %v990_v4 = vpop.trf.xlu0  ;;  %v1122_v11 = vmul.f32 %v3259_v62, %v4889_v7  ;;  %v1510_v13 = vmul.f32 %v3267_v33, %v4889_v7  ;;  %v1478_v59 = vmul.f32 %v3267_v33, %v4890_v54 }
 0x249   :  { %1404 = vst [vmem:[%s4462_s3 + $0x548] sm:$0xff] %v1308_v24  ;;  %1792 = vst [vmem:[%s4462_s3 + $0x558] sm:$0xff] %v1696_v26  ;;  %v1214_v46 = vmul.f32 %v3269_v2, %v1022_v39  ;;  %v1602_v51 = vmul.f32 %v3271_v37, %v1022_v39  ;;  %v1182_v12 = vmul.f32 %v3269_v2, %v990_v4 }
 0x24a   :  { %1372 = vst [vmem:[%s4462_s3 + $0x348] sm:$0xff] %v1276_v56  ;;  %1760 = vst [vmem:[%s4462_s3 + $0x358] sm:$0xff] %v1664_v45  ;;  %v1570_v14 = vmul.f32 %v3271_v37, %v990_v4  ;;  %v4892_v4 = vld [vmem:[#allocation75_spill] sm:$0xff] }
 0x24b   :  { %v1310_v61 = vadd.f32 %v1214_v46, %v1116_v49  ;;  %v1698_v63 = vadd.f32 %v1602_v51, %v1504_v15  ;;  %v1278_v23 = vadd.f32 %v1182_v12, %v1084_v42  ;;  %v4891_v42 = vld [vmem:[#allocation71_spill] sm:$0xff]  ;;  %v1092_v46 = vmul.f32 %v3259_v62, %v4892_v4 }
 0x24c   :  { %v1666_v27 = vadd.f32 %v1570_v14, %v1472_v17  ;;  %v1023_v20 = vpop.trf.xlu1  ;;  %v991_v22 = vpop.trf.xlu0  ;;  %v1124_v17 = vmul.f32 %v3259_v62, %v4891_v42  ;;  %v1512_v39 = vmul.f32 %v3267_v33, %v4891_v42  ;;  %v1480_v51 = vmul.f32 %v3267_v33, %v4892_v4 }
 0x24d   :  { %1406 = vst [vmem:[%s4462_s3 + $0x568] sm:$0xff] %v1310_v61  ;;  %1794 = vst [vmem:[%s4462_s3 + $0x578] sm:$0xff] %v1698_v63  ;;  %v1216_v28 = vmul.f32 %v3269_v2, %v1023_v20  ;;  %v1604_v30 = vmul.f32 %v3271_v37, %v1023_v20  ;;  %v1184_v44 = vmul.f32 %v3269_v2, %v991_v22 }
 0x24e   :  { %1374 = vst [vmem:[%s4462_s3 + $0x368] sm:$0xff] %v1278_v23  ;;  %1762 = vst [vmem:[%s4462_s3 + $0x378] sm:$0xff] %v1666_v27  ;;  %v1572_v48 = vmul.f32 %v3271_v37, %v991_v22 }
 0x24f   :  { %v1312_v31 = vadd.f32 %v1216_v28, %v1118_v6  ;;  %v1700_v35 = vadd.f32 %v1604_v30, %v1506_v9  ;;  %v1280_v53 = vadd.f32 %v1184_v44, %v1086_v36 }
 0x250   :  { %v1668_v55 = vadd.f32 %v1572_v48, %v1474_v38  ;;  %v1024_v60 = vpop.trf.xlu1  ;;  %v992_v21 = vpop.trf.xlu0 }
 0x251   :  { %1408 = vst [vmem:[%s4462_s3 + $0x588] sm:$0xff] %v1312_v31  ;;  %1796 = vst [vmem:[%s4462_s3 + $0x598] sm:$0xff] %v1700_v35  ;;  %v1218_v29 = vmul.f32 %v3269_v2, %v1024_v60  ;;  %v1606_v58 = vmul.f32 %v3271_v37, %v1024_v60  ;;  %v1186_v40 = vmul.f32 %v3269_v2, %v992_v21 }
 0x252   :  { %1376 = vst [vmem:[%s4462_s3 + $0x388] sm:$0xff] %v1280_v53  ;;  %1764 = vst [vmem:[%s4462_s3 + $0x398] sm:$0xff] %v1668_v55  ;;  %v1574_v43 = vmul.f32 %v3271_v37, %v992_v21 }
 0x253   :  { %v1314_v16 = vadd.f32 %v1218_v29, %v1120_v3  ;;  %v1702_v18 = vadd.f32 %v1606_v58, %v1508_v8  ;;  %v1282_v50 = vadd.f32 %v1186_v40, %v1088_v52 }
 0x254   :  { %v1670_v41 = vadd.f32 %v1574_v43, %v1476_v0  ;;  %v1025_v32 = vpop.trf.xlu1  ;;  %v993_v34 = vpop.trf.xlu0 }
 0x255   :  { %1410 = vst [vmem:[%s4462_s3 + $0x5a8] sm:$0xff] %v1314_v16  ;;  %1798 = vst [vmem:[%s4462_s3 + $0x5b8] sm:$0xff] %v1702_v18  ;;  %v1220_v24 = vmul.f32 %v3269_v2, %v1025_v32  ;;  %v1608_v26 = vmul.f32 %v3271_v37, %v1025_v32  ;;  %v1188_v56 = vmul.f32 %v3269_v2, %v993_v34 }
 0x256   :  { %1378 = vst [vmem:[%s4462_s3 + $0x3a8] sm:$0xff] %v1282_v50  ;;  %1766 = vst [vmem:[%s4462_s3 + $0x3b8] sm:$0xff] %v1670_v41  ;;  %v1576_v45 = vmul.f32 %v3271_v37, %v993_v34 }
 0x257   :  { %v1316_v47 = vadd.f32 %v1220_v24, %v1122_v11  ;;  %v1704_v49 = vadd.f32 %v1608_v26, %v1510_v13  ;;  %v1284_v15 = vadd.f32 %v1188_v56, %v1090_v57 }
 0x258   :  { %v1672_v19 = vadd.f32 %v1576_v45, %v1478_v59  ;;  %v1026_v12 = vpop.trf.xlu1  ;;  %v994_v14 = vpop.trf.xlu0 }
 0x259   :  { %1412 = vst [vmem:[%s4462_s3 + $0x5c8] sm:$0xff] %v1316_v47  ;;  %1800 = vst [vmem:[%s4462_s3 + $0x5d8] sm:$0xff] %v1704_v49  ;;  %v1222_v33 = vmul.f32 %v3269_v2, %v1026_v12  ;;  %v1610_v62 = vmul.f32 %v3271_v37, %v1026_v12  ;;  %v1190_v61 = vmul.f32 %v3269_v2, %v994_v14 }
 0x25a   :  { %1380 = vst [vmem:[%s4462_s3 + $0x3c8] sm:$0xff] %v1284_v15  ;;  %1768 = vst [vmem:[%s4462_s3 + $0x3d8] sm:$0xff] %v1672_v19  ;;  %v1578_v63 = vmul.f32 %v3271_v37, %v994_v14 }
 0x25b   :  { %v1318_v23 = vadd.f32 %v1222_v33, %v1124_v17  ;;  %v1706_v27 = vadd.f32 %v1610_v62, %v1512_v39  ;;  %v1286_v5 = vadd.f32 %v1190_v61, %v1092_v46 }
 0x25c   :  { %v1674_v6 = vadd.f32 %v1578_v63, %v1480_v51 }
 0x25d   :  { %1414 = vst [vmem:[%s4462_s3 + $0x5e8] sm:$0xff] %v1318_v23  ;;  %1802 = vst [vmem:[%s4462_s3 + $0x5f8] sm:$0xff] %v1706_v27 }
 0x25e   :  { %1382 = vst [vmem:[%s4462_s3 + $0x3e8] sm:$0xff] %v1286_v5  ;;  %1770 = vst [vmem:[%s4462_s3 + $0x3f8] sm:$0xff] %v1674_v6 }
 0x25f   :  { %1807 = vsyncpa [#allocation3], 1 }

</bundles_post_ra>
